<compile_context>
chip_gen: v7x
topology: tpu7x:2x2x1
jax: 0.10.0
libtpu: 0.0.40
codegen_flags: <defaults>
</compile_context>

<pallas_src>
import functools
import random

import numpy as np
import jax
import jax.numpy as jnp
from jax.experimental import pallas as pl
from jax.experimental.pallas import tpu as pltpu

MULTI_N_NUM = 2       # self.multi_n_num
FFT_SCALE = 0.01      # scale in normalize_fft
NORM_EPS = 1e-8       # eps in normalize_fft
RATIO_EPS = 1e-7      # eps in d_ap / (d_an + eps)


def sample_with_j(k, n, j):
    # verbatim port of the host-side helper from the PyTorch code
    if n >= k:
        raise ValueError('n must be less than k.')
    if j < 0 or j > k:
        raise ValueError('j must be in the range 0 to k.')
    numbers = list(range(k))
    if j not in numbers:
        raise ValueError('j must be in the range 0 to k.')
    sample = [j]
    remaining = [num for num in numbers if num != j]
    sample.extend(random.sample(remaining, n - 1))
    return sample


def _dft2_matrix_stacked(h, w):
    """(H*W, 2*H*W) bf16 matrix [Re | Im] of the forward 2-D DFT.

    For x flattened row-major over (h', w') and Y flattened row-major over
    (u, v):  Y_flat = x_flat @ (Re + i*Im),
    M[h'*W+w', u*W+v] = exp(-2*pi*i*(u*h'/H + v*w'/W)).
    """
    u = np.arange(h, dtype=np.float64)
    v = np.arange(w, dtype=np.float64)
    ang_h = 2.0 * np.pi * np.outer(u, u) / h          # ang_h[h', u]
    ang_w = 2.0 * np.pi * np.outer(v, v) / w          # ang_w[w', v]
    ang = (ang_h[:, None, :, None] + ang_w[None, :, None, :]).reshape(h * w, h * w)
    m = np.concatenate([np.cos(ang), -np.sin(ang)], axis=1)   # (HW, 2*HW)
    return jnp.asarray(m, dtype=jnp.bfloat16)


def _vmem_budget_bytes():
    """Generation-aware VMEM budget (~3/4 of physical, capped at 96 MiB)."""
    cap = 64 * 1024 * 1024          # conservative default (v7x physical VMEM)
    try:
        info = pltpu.get_tpu_info()
        cap = int(getattr(info, "vmem_capacity_bytes", cap) or cap)
    except Exception:
        pass
    return max(32 * 1024 * 1024, min(cap * 3 // 4, 96 * 1024 * 1024))


def _pick_tb(n_imgs, channels, hw, vmem_budget, matrix_bytes, target_rows=512):
    """Images per grid step for kernel 1.

    Prefer a tile whose matmul M-dimension (tb*C rows) reaches `target_rows`
    (fills the MXU), then the biggest tile that still fits the VMEM budget.
    """
    divisors = [d for d in range(1, n_imgs + 1) if n_imgs % d == 0]

    def rows_ok(tb):     # sublane tiling: tb*C multiple of 8, or the full array
        return (tb * channels) % 8 == 0 or tb == n_imgs

    def fits(tb):
        blk = tb * channels * hw
        need = (2 * blk * 2          # bf16 input block, double-buffered
                + 2 * 2 * blk * 4    # f32 output block (2*HW lanes), double-buffered
                + 2 * blk * 4        # in-kernel f32 matmul result
                + matrix_bytes)      # resident DFT matrix
        return need <= int(vmem_budget * 0.8)

    legal = [d for d in divisors if rows_ok(d)] or [n_imgs]
    fitting = [d for d in legal if fits(d)]
    if not fitting:
        return min(legal)
    target = min(target_rows, n_imgs * channels)
    reach = [d for d in fitting if d * channels >= target]
    return min(reach) if reach else max(fitting)


def _dft_norm_kernel(x_ref, m_ref, z_ref, *, channels):
    """2-D DFT (one wide MXU matmul) + channel-L2 norm + scale.

    x_ref: (tb*C, HW)    bf16 input rows
    m_ref: (HW, 2*HW)    bf16 stacked [Re | Im] DFT matrix (grid-invariant)
    z_ref: (tb, C, 2*HW) f32 normalised FFT; real half in [..., :HW].
    """
    rows, hw = x_ref.shape
    tb = rows // channels
    y = jnp.dot(x_ref[...], m_ref[...], preferred_element_type=jnp.float32)
    y3 = y.reshape(tb, channels, 2 * hw)
    # torch.norm(fft, p=2, dim=1, keepdim=True) on complex values.
    s = jnp.sum(y3 * y3, axis=1, keepdims=True)             # (tb, 1, 2*HW)
    norm = jnp.sqrt(s[..., :hw] + s[..., hw:])               # (tb, 1, HW)
    # Exact divide kept on purpose: negligible next to the matmul, and avoids
    # stacking approx-reciprocal error on top of the bf16 MXU operands.
    scale = FFT_SCALE / (norm + NORM_EPS)
    scale2 = jnp.concatenate([scale, scale], axis=-1)        # (tb, 1, 2*HW)
    z_ref[...] = y3 * scale2                                 # single lane-dense store


def _fft_norm_call(x2, dft_m, n_imgs, channels, hw):
    budget = _vmem_budget_bytes()
    m_bytes = dft_m.size * dft_m.dtype.itemsize
    # Grid-invariant matrix: single-buffer it once double-buffering is costly
    # (matters most on v7x's 64 MiB VMEM); at small sizes keep the default.
    if 2 * m_bytes > 2 * 1024 * 1024:
        m_spec = pl.BlockSpec((hw, 2 * hw), lambda i: (0, 0),
                              pipeline_mode=pl.Buffered(1))
        m_resident = m_bytes
    else:
        m_spec = pl.BlockSpec((hw, 2 * hw), lambda i: (0, 0))
        m_resident = 2 * m_bytes

    tb = _pick_tb(n_imgs, channels, hw, budget, m_resident)
    rows_blk = tb * channels
    return pl.pallas_call(
        functools.partial(_dft_norm_kernel, channels=channels),
        out_shape=jax.ShapeDtypeStruct((n_imgs, channels, 2 * hw), jnp.float32),
        grid_spec=pltpu.PrefetchScalarGridSpec(
            num_scalar_prefetch=0,
            grid=(n_imgs // tb,),
            in_specs=[pl.BlockSpec((rows_blk, hw), lambda i: (i, 0)), m_spec],
            out_specs=pl.BlockSpec((tb, channels, 2 * hw), lambda i: (i, 0, 0)),
        ),
        compiler_params=pltpu.CompilerParams(
            dimension_semantics=("parallel",),
            vmem_limit_bytes=budget,
        ),
    )(x2, dft_m)


def _dist_kernel(idx_ref, *refs, multi_n_num):
    """Per-anchor contrastive ratios: sum_k d_ap / (d_an[k] + eps).

    refs: za, zp, zn_0..zn_{mn-1} blocks of shape (1, C, 2*HW) f32 (negatives
    block-gathered via the scalar-prefetched sample indices), followed by the
    (1, 8, 128) per-anchor output block (broadcast scalar, summed in XLA).
    """
    del idx_ref  # consumed by the index_maps
    za_ref, zp_ref = refs[0], refs[1]
    zn_refs = refs[2:2 + multi_n_num]
    out_ref = refs[2 + multi_n_num]

    _, c, two_hw = za_ref.shape
    hw = two_hw // 2
    inv_elems = 1.0 / (c * hw)

    za = za_ref[...]
    ar, ai = za[..., :hw], za[..., hw:]

    def complex_l1(zb):
        dr = ar - zb[..., :hw]
        di = ai - zb[..., hw:]
        m = jnp.sqrt(dr * dr + di * di)                              # (1, C, HW)
        s = jnp.sum(jnp.sum(m, axis=1, keepdims=True), axis=2, keepdims=True)
        return s * inv_elems                                          # (1, 1, 1)

    d_ap = complex_l1(zp_ref[...])
    acc = jnp.zeros((1, 1, 1), jnp.float32)
    for zn_ref in zn_refs:                                            # mn is static
        d_an = complex_l1(zn_ref[...])
        acc = acc + d_ap / (d_an + RATIO_EPS)
    out_ref[...] = jnp.broadcast_to(acc, out_ref.shape)


def _distance_call(z, idx, batch, channels, hw, multi_n_num):
    blk = (1, channels, 2 * hw)
    a_spec = pl.BlockSpec(blk, lambda i, idx_ref: (i, 0, 0))
    p_spec = pl.BlockSpec(blk, lambda i, idx_ref: (batch + i, 0, 0))
    n_specs = [
        pl.BlockSpec(blk, lambda i, idx_ref, k=k: (2 * batch + idx_ref[i, k], 0, 0))
        for k in range(multi_n_num)
    ]
    return pl.pallas_call(
        functools.partial(_dist_kernel, multi_n_num=multi_n_num),
        out_shape=jax.ShapeDtypeStruct((batch, 8, 128), jnp.float32),
        grid_spec=pltpu.PrefetchScalarGridSpec(
            num_scalar_prefetch=1,
            grid=(batch,),
            in_specs=[a_spec, p_spec] + n_specs,
            out_specs=pl.BlockSpec((1, 8, 128), lambda i, idx_ref: (i, 0, 0)),
        ),
        compiler_params=pltpu.CompilerParams(dimension_semantics=("parallel",)),
    )(idx, *([z] * (2 + multi_n_num)))


@functools.partial(jax.jit, static_argnames=("multi_n_num",))
def _fcr_jit(a, p, n, idx, multi_n_num):
    B, C, H, W = a.shape
    hw = H * W
    # Stack a, p, n on the batch axis; flatten to a 2-D lane-dense MXU operand.
    x2 = jnp.concatenate([a, p, n], axis=0).reshape(3 * B * C, hw).astype(jnp.bfloat16)
    dft_m = _dft2_matrix_stacked(H, W)                               # (HW, 2*HW) bf16
    z = _fft_norm_call(x2, dft_m, n_imgs=3 * B, channels=C, hw=hw)   # (3B, C, 2*HW) f32
    ratios = _distance_call(z, idx, B, C, hw, multi_n_num)           # (B, 8, 128)
    total = jnp.sum(ratios[:, 0, 0])
    return total / (multi_n_num * B)


def fcr_forward(a, p, n, samples=None, multi_n_num=MULTI_N_NUM):
    """Pallas-backed FCR.forward(a, p, n)."""
    B = a.shape[0]
    if samples is None:
        # Host-side negative sampling, exactly as in the PyTorch forward.
        samples = [sample_with_j(B, multi_n_num, i) for i in range(B)]
    idx = jnp.asarray(np.asarray(samples, dtype=np.int32))           # (B, mn)
    return _fcr_jit(a, p, n, idx, multi_n_num=multi_n_num)


def _reference(a, p, n, samples):
    """Pure NumPy float64 reference mirroring the PyTorch forward (fft2 path)."""
    a, p, n = (np.asarray(t, np.float64) for t in (a, p, n))

    def fft_norm(x):
        f = np.fft.fft2(x)                                            # (B,C,H,W) complex
        nrm = np.sqrt(np.sum(np.abs(f) ** 2, axis=1, keepdims=True))
        return f / (nrm + NORM_EPS) * FFT_SCALE

    za, zp, zn = fft_norm(a), fft_norm(p), fft_norm(n)
    B = a.shape[0]
    total = 0.0
    for i in range(B):
        d_ap = np.mean(np.abs(za[i] - zp[i]))
        for j in samples[i]:
            d_an = np.mean(np.abs(za[i] - zn[j]))
            total += d_ap / (d_an + RATIO_EPS)
    return total / (len(samples[0]) * B)


if __name__ == "__main__":
    random.seed(0)   # determinism for the host-side negative sampling

    B, C, H, W = 4, 4, 16, 16
    key = jax.random.PRNGKey(0)
    ka, kp, kn = jax.random.split(key, 3)
    a = jax.random.normal(ka, (B, C, H, W), dtype=jnp.float32)
    p = jax.random.normal(kp, (B, C, H, W), dtype=jnp.float32)
    n = jax.random.normal(kn, (B, C, H, W), dtype=jnp.float32)

    # Sample negatives once so kernel path and reference use identical indices
    # (the PyTorch module samples them host-side inside forward).
    samples = [sample_with_j(B, MULTI_N_NUM, i) for i in range(B)]

    out = jax.block_until_ready(fcr_forward(a, p, n, samples=samples))
    ref = _reference(a, p, n, samples)

    if not np.allclose(np.asarray(out), ref, rtol=1e-2, atol=1e-4):
        raise RuntimeError(f"mismatch: kernel={float(out)} ref={float(ref)}")

    print("KERNEL_OK")
</pallas_src>

<mosaic_0001>
module attributes {stable_mosaic.version = 11 : i64} {
  func.func @_dft_norm_kernel(%arg0: i32, %arg1: memref<48x256xbf16, #tpu.memory_space<vmem>>, %arg2: memref<256x512xbf16, #tpu.memory_space<vmem>>, %arg3: memref<12x4x512xf32, #tpu.memory_space<vmem>>) attributes {dimension_semantics = [#tpu.dimension_semantics<parallel>], iteration_bounds = array<i64: 1>, scalar_prefetch = 0 : i64, scratch_operands = 0 : i64, tpu.core_type = #tpu.core_type<tc>, window_params = [{transform_indices = @transform_0, window_bounds = array<i64: 48, 256>}, {pipeline_mode = #tpu.pipeline_mode<synchronous>, transform_indices = @transform_1, window_bounds = array<i64: 256, 512>}, {transform_indices = @transform_2, window_bounds = array<i64: 12, 4, 512>}]} {
    %c0 = arith.constant 0 : index
    %c0_0 = arith.constant 0 : index
    %0 = vector.load %arg1[%c0, %c0_0] : memref<48x256xbf16, #tpu.memory_space<vmem>>, vector<48x256xbf16>
    %c0_1 = arith.constant 0 : index
    %c0_2 = arith.constant 0 : index
    %1 = vector.load %arg2[%c0_1, %c0_2] : memref<256x512xbf16, #tpu.memory_space<vmem>>, vector<256x512xbf16>
    %cst = arith.constant dense<0.000000e+00> : vector<48x512xf32>
    %2 = tpu.matmul %0, %1, %cst {dimension_numbers = #tpu.dot_dimension_numbers<[1], [0], [0], [1], [0, 0, 1, 1], [], []>} : vector<48x256xbf16>, vector<256x512xbf16>, vector<48x512xf32> -> vector<48x512xf32>
    %3 = vector.shape_cast %2 : vector<48x512xf32> to vector<12x4x512xf32>
    %4 = arith.mulf %3, %3 : vector<12x4x512xf32>
    %cst_3 = arith.constant dense<0.000000e+00> : vector<12x512xf32>
    %5 = vector.multi_reduction <add>, %4, %cst_3 [1] : vector<12x4x512xf32> to vector<12x512xf32>
    %6 = vector.shape_cast %5 : vector<12x512xf32> to vector<12x1x512xf32>
    %7 = vector.extract_strided_slice %6 {offsets = [0, 0, 0], sizes = [12, 1, 256], strides = [1, 1, 1]} : vector<12x1x512xf32> to vector<12x1x256xf32>
    %8 = vector.extract_strided_slice %6 {offsets = [0, 0, 256], sizes = [12, 1, 256], strides = [1, 1, 1]} : vector<12x1x512xf32> to vector<12x1x256xf32>
    %9 = arith.addf %7, %8 : vector<12x1x256xf32>
    %10 = math.sqrt %9 : vector<12x1x256xf32>
    %cst_4 = arith.constant 9.99999993E-9 : f32
    %11 = vector.broadcast %cst_4 : f32 to vector<12x1x256xf32>
    %12 = arith.addf %10, %11 : vector<12x1x256xf32>
    %cst_5 = arith.constant 0.00999999977 : f32
    %13 = vector.broadcast %cst_5 : f32 to vector<12x1x256xf32>
    %14 = arith.divf %13, %12 : vector<12x1x256xf32>
    %15 = tpu.concatenate %14, %14 in 2 : vector<12x1x256xf32>, vector<12x1x256xf32> -> vector<12x1x512xf32>
    %16 = vector.broadcast %15 : vector<12x1x512xf32> to vector<12x4x512xf32>
    %17 = arith.mulf %3, %16 : vector<12x4x512xf32>
    %c0_6 = arith.constant 0 : index
    %c0_7 = arith.constant 0 : index
    %c0_8 = arith.constant 0 : index
    %18 = vector.load %arg3[%c0_6, %c0_7, %c0_8] : memref<12x4x512xf32, #tpu.memory_space<vmem>>, vector<12x4x512xf32>
    tpu.vector_store %arg3[%c0_6, %c0_7, %c0_8], %17 {strides = array<i32>} : memref<12x4x512xf32, #tpu.memory_space<vmem>>, vector<12x4x512xf32>,
    return
  }
  func.func @transform_0(%arg0: i32) -> (i32, i32) {
    %c0_i32 = arith.constant 0 : i32
    %c0_i32_0 = arith.constant 0 : i32
    return %arg0, %c0_i32 : i32, i32
  }
  func.func @transform_1(%arg0: i32) -> (i32, i32) {
    %c0_i32 = arith.constant 0 : i32
    %c0_i32_0 = arith.constant 0 : i32
    %c0_i32_1 = arith.constant 0 : i32
    return %c0_i32, %c0_i32_0 : i32, i32
  }
  func.func @transform_2(%arg0: i32) -> (i32, i32, i32) {
    %c0_i32 = arith.constant 0 : i32
    %c0_i32_0 = arith.constant 0 : i32
    %c0_i32_1 = arith.constant 0 : i32
    return %arg0, %c0_i32, %c0_i32_0 : i32, i32, i32
  }
}

module attributes {stable_mosaic.version = 11 : i64} {
  func.func @_dist_kernel(%arg0: i32, %arg1: memref<4x2xi32, #tpu.memory_space<smem>>, %arg2: memref<1x4x512xf32, #tpu.memory_space<vmem>>, %arg3: memref<1x4x512xf32, #tpu.memory_space<vmem>>, %arg4: memref<1x4x512xf32, #tpu.memory_space<vmem>>, %arg5: memref<1x4x512xf32, #tpu.memory_space<vmem>>, %arg6: memref<1x8x128xf32, #tpu.memory_space<vmem>>) attributes {dimension_semantics = [#tpu.dimension_semantics<parallel>], iteration_bounds = array<i64: 4>, scalar_prefetch = 1 : i64, scratch_operands = 0 : i64, tpu.core_type = #tpu.core_type<tc>, window_params = [{transform_indices = @transform_0, window_bounds = array<i64: 1, 4, 512>}, {transform_indices = @transform_1, window_bounds = array<i64: 1, 4, 512>}, {transform_indices = @transform_2, window_bounds = array<i64: 1, 4, 512>}, {transform_indices = @transform_3, window_bounds = array<i64: 1, 4, 512>}, {transform_indices = @transform_4, window_bounds = array<i64: 1, 8, 128>}]} {
    %c0 = arith.constant 0 : index
    %c0_0 = arith.constant 0 : index
    %c0_1 = arith.constant 0 : index
    %0 = vector.load %arg2[%c0, %c0_0, %c0_1] : memref<1x4x512xf32, #tpu.memory_space<vmem>>, vector<1x4x512xf32>
    %1 = vector.extract_strided_slice %0 {offsets = [0, 0, 0], sizes = [1, 4, 256], strides = [1, 1, 1]} : vector<1x4x512xf32> to vector<1x4x256xf32>
    %2 = vector.extract_strided_slice %0 {offsets = [0, 0, 256], sizes = [1, 4, 256], strides = [1, 1, 1]} : vector<1x4x512xf32> to vector<1x4x256xf32>
    %c0_2 = arith.constant 0 : index
    %c0_3 = arith.constant 0 : index
    %c0_4 = arith.constant 0 : index
    %3 = vector.load %arg3[%c0_2, %c0_3, %c0_4] : memref<1x4x512xf32, #tpu.memory_space<vmem>>, vector<1x4x512xf32>
    %4 = vector.extract_strided_slice %3 {offsets = [0, 0, 0], sizes = [1, 4, 256], strides = [1, 1, 1]} : vector<1x4x512xf32> to vector<1x4x256xf32>
    %5 = arith.subf %1, %4 : vector<1x4x256xf32>
    %6 = vector.extract_strided_slice %3 {offsets = [0, 0, 256], sizes = [1, 4, 256], strides = [1, 1, 1]} : vector<1x4x512xf32> to vector<1x4x256xf32>
    %7 = arith.subf %2, %6 : vector<1x4x256xf32>
    %8 = arith.mulf %5, %5 : vector<1x4x256xf32>
    %9 = arith.mulf %7, %7 : vector<1x4x256xf32>
    %10 = arith.addf %8, %9 : vector<1x4x256xf32>
    %11 = math.sqrt %10 : vector<1x4x256xf32>
    %cst = arith.constant dense<0.000000e+00> : vector<1x256xf32>
    %12 = vector.multi_reduction <add>, %11, %cst [1] : vector<1x4x256xf32> to vector<1x256xf32>
    %13 = vector.shape_cast %12 : vector<1x256xf32> to vector<1x1x256xf32>
    %cst_5 = arith.constant dense<0.000000e+00> : vector<1x1xf32>
    %14 = vector.multi_reduction <add>, %13, %cst_5 [2] : vector<1x1x256xf32> to vector<1x1xf32>
    %15 = vector.shape_cast %14 : vector<1x1xf32> to vector<1x1x1xf32>
    %cst_6 = arith.constant 9.765625E-4 : f32
    %16 = vector.broadcast %cst_6 : f32 to vector<1x1x1xf32>
    %17 = arith.mulf %15, %16 : vector<1x1x1xf32>
    %cst_7 = arith.constant 0.000000e+00 : f32
    %18 = vector.broadcast %cst_7 : f32 to vector<1x1x1xf32>
    %c0_8 = arith.constant 0 : index
    %c0_9 = arith.constant 0 : index
    %c0_10 = arith.constant 0 : index
    %19 = vector.load %arg4[%c0_8, %c0_9, %c0_10] : memref<1x4x512xf32, #tpu.memory_space<vmem>>, vector<1x4x512xf32>
    %20 = vector.extract_strided_slice %19 {offsets = [0, 0, 0], sizes = [1, 4, 256], strides = [1, 1, 1]} : vector<1x4x512xf32> to vector<1x4x256xf32>
    %21 = arith.subf %1, %20 : vector<1x4x256xf32>
    %22 = vector.extract_strided_slice %19 {offsets = [0, 0, 256], sizes = [1, 4, 256], strides = [1, 1, 1]} : vector<1x4x512xf32> to vector<1x4x256xf32>
    %23 = arith.subf %2, %22 : vector<1x4x256xf32>
    %24 = arith.mulf %21, %21 : vector<1x4x256xf32>
    %25 = arith.mulf %23, %23 : vector<1x4x256xf32>
    %26 = arith.addf %24, %25 : vector<1x4x256xf32>
    %27 = math.sqrt %26 : vector<1x4x256xf32>
    %cst_11 = arith.constant dense<0.000000e+00> : vector<1x256xf32>
    %28 = vector.multi_reduction <add>, %27, %cst_11 [1] : vector<1x4x256xf32> to vector<1x256xf32>
    %29 = vector.shape_cast %28 : vector<1x256xf32> to vector<1x1x256xf32>
    %cst_12 = arith.constant dense<0.000000e+00> : vector<1x1xf32>
    %30 = vector.multi_reduction <add>, %29, %cst_12 [2] : vector<1x1x256xf32> to vector<1x1xf32>
    %31 = vector.shape_cast %30 : vector<1x1xf32> to vector<1x1x1xf32>
    %cst_13 = arith.constant 9.765625E-4 : f32
    %32 = vector.broadcast %cst_13 : f32 to vector<1x1x1xf32>
    %33 = arith.mulf %31, %32 : vector<1x1x1xf32>
    %cst_14 = arith.constant 1.000000e-07 : f32
    %34 = vector.broadcast %cst_14 : f32 to vector<1x1x1xf32>
    %35 = arith.addf %33, %34 : vector<1x1x1xf32>
    %36 = arith.divf %17, %35 : vector<1x1x1xf32>
    %37 = arith.addf %18, %36 : vector<1x1x1xf32>
    %c0_15 = arith.constant 0 : index
    %c0_16 = arith.constant 0 : index
    %c0_17 = arith.constant 0 : index
    %38 = vector.load %arg5[%c0_15, %c0_16, %c0_17] : memref<1x4x512xf32, #tpu.memory_space<vmem>>, vector<1x4x512xf32>
    %39 = vector.extract_strided_slice %38 {offsets = [0, 0, 0], sizes = [1, 4, 256], strides = [1, 1, 1]} : vector<1x4x512xf32> to vector<1x4x256xf32>
    %40 = arith.subf %1, %39 : vector<1x4x256xf32>
    %41 = vector.extract_strided_slice %38 {offsets = [0, 0, 256], sizes = [1, 4, 256], strides = [1, 1, 1]} : vector<1x4x512xf32> to vector<1x4x256xf32>
    %42 = arith.subf %2, %41 : vector<1x4x256xf32>
    %43 = arith.mulf %40, %40 : vector<1x4x256xf32>
    %44 = arith.mulf %42, %42 : vector<1x4x256xf32>
    %45 = arith.addf %43, %44 : vector<1x4x256xf32>
    %46 = math.sqrt %45 : vector<1x4x256xf32>
    %cst_18 = arith.constant dense<0.000000e+00> : vector<1x256xf32>
    %47 = vector.multi_reduction <add>, %46, %cst_18 [1] : vector<1x4x256xf32> to vector<1x256xf32>
    %48 = vector.shape_cast %47 : vector<1x256xf32> to vector<1x1x256xf32>
    %cst_19 = arith.constant dense<0.000000e+00> : vector<1x1xf32>
    %49 = vector.multi_reduction <add>, %48, %cst_19 [2] : vector<1x1x256xf32> to vector<1x1xf32>
    %50 = vector.shape_cast %49 : vector<1x1xf32> to vector<1x1x1xf32>
    %cst_20 = arith.constant 9.765625E-4 : f32
    %51 = vector.broadcast %cst_20 : f32 to vector<1x1x1xf32>
    %52 = arith.mulf %50, %51 : vector<1x1x1xf32>
    %cst_21 = arith.constant 1.000000e-07 : f32
    %53 = vector.broadcast %cst_21 : f32 to vector<1x1x1xf32>
    %54 = arith.addf %52, %53 : vector<1x1x1xf32>
    %55 = arith.divf %17, %54 : vector<1x1x1xf32>
    %56 = arith.addf %37, %55 : vector<1x1x1xf32>
    %57 = vector.shape_cast %56 : vector<1x1x1xf32> to vector<1x1x1xf32>
    %58 = vector.broadcast %57 : vector<1x1x1xf32> to vector<1x8x128xf32>
    %c0_22 = arith.constant 0 : index
    %c0_23 = arith.constant 0 : index
    %c0_24 = arith.constant 0 : index
    %59 = vector.load %arg6[%c0_22, %c0_23, %c0_24] : memref<1x8x128xf32, #tpu.memory_space<vmem>>, vector<1x8x128xf32>
    tpu.vector_store %arg6[%c0_22, %c0_23, %c0_24], %58 {strides = array<i32>} : memref<1x8x128xf32, #tpu.memory_space<vmem>>, vector<1x8x128xf32>,
    return
  }
  func.func @transform_0(%arg0: i32, %arg1: memref<4x2xi32, #tpu.memory_space<smem>>) -> (i32, i32, i32) {
    %c0_i32 = arith.constant 0 : i32
    %c0_i32_0 = arith.constant 0 : i32
    %c0_i32_1 = arith.constant 0 : i32
    return %arg0, %c0_i32, %c0_i32_0 : i32, i32, i32
  }
  func.func @transform_1(%arg0: i32, %arg1: memref<4x2xi32, #tpu.memory_space<smem>>) -> (i32, i32, i32) {
    %c4_i32 = arith.constant 4 : i32
    %0 = arith.addi %c4_i32, %arg0 : i32
    %c0_i32 = arith.constant 0 : i32
    %c0_i32_0 = arith.constant 0 : i32
    %c0_i32_1 = arith.constant 0 : i32
    return %0, %c0_i32, %c0_i32_0 : i32, i32, i32
  }
  func.func @transform_2(%arg0: i32, %arg1: memref<4x2xi32, #tpu.memory_space<smem>>) -> (i32, i32, i32) {
    %0 = arith.index_cast %arg0 : i32 to index
    %c0 = arith.constant 0 : index
    %1 = memref.load %arg1[%0, %c0] : memref<4x2xi32, #tpu.memory_space<smem>>
    %c8_i32 = arith.constant 8 : i32
    %2 = arith.addi %c8_i32, %1 : i32
    %c0_i32 = arith.constant 0 : i32
    %c0_i32_0 = arith.constant 0 : i32
    %c0_i32_1 = arith.constant 0 : i32
    return %2, %c0_i32, %c0_i32_0 : i32, i32, i32
  }
  func.func @transform_3(%arg0: i32, %arg1: memref<4x2xi32, #tpu.memory_space<smem>>) -> (i32, i32, i32) {
    %0 = arith.index_cast %arg0 : i32 to index
    %c1 = arith.constant 1 : index
    %1 = memref.load %arg1[%0, %c1] : memref<4x2xi32, #tpu.memory_space<smem>>
    %c8_i32 = arith.constant 8 : i32
    %2 = arith.addi %c8_i32, %1 : i32
    %c0_i32 = arith.constant 0 : i32
    %c0_i32_0 = arith.constant 0 : i32
    %c0_i32_1 = arith.constant 0 : i32
    return %2, %c0_i32, %c0_i32_0 : i32, i32, i32
  }
  func.func @transform_4(%arg0: i32, %arg1: memref<4x2xi32, #tpu.memory_space<smem>>) -> (i32, i32, i32) {
    %c0_i32 = arith.constant 0 : i32
    %c0_i32_0 = arith.constant 0 : i32
    %c0_i32_1 = arith.constant 0 : i32
    return %arg0, %c0_i32, %c0_i32_0 : i32, i32, i32
  }
}

</mosaic_0001>

<bundles_post_ra>
// kernel: _fcr_jit.3
= control target key start
LH: loop header
LB: loop body
LE: loop exit
PB: predicated region body
PF: predicated region fallthrough
CT: control target
= control target key end

     0   :  { %s670_s0 = inlined_call_operand.vmem [shape: s32[4,2], index: 0, kind: input, shape index: {}]   ;;  %s671_s1 = inlined_call_operand.vmem [shape: f32[12,4,512], index: 1, kind: input, shape index: {}, may-alias: {1,2,3,4}]   ;;  %s672_s2 = inlined_call_operand.vmem [shape: f32[12,4,512], index: 2, kind: input, shape index: {}, may-alias: {1,2,3,4}]   ;;  %s673_s3 = inlined_call_operand.vmem [shape: f32[12,4,512], index: 3, kind: input, shape index: {}, may-alias: {1,2,3,4}]   ;;  %s674_s4 = inlined_call_operand.vmem [shape: f32[12,4,512], index: 4, kind: input, shape index: {}, may-alias: {1,2,3,4}]   ;;  %s675_s5 = inlined_call_operand.vmem [shape: f32[4,8,128], index: 5, kind: output, shape index: {}]  }
   0x1   :  { %s10_s20 = sshll.u32 %s670_s0, 4  ;;  %s11_s20 = int_to_ptr.vmem [resolvable:$true] %s10_s20 }
   0x2   :  { %s574_s21 = scalar_lea.vmem %s11_s20, 64  ;;  %p579_p1 = scmp.lt.s32.totalorder %s11_s20, %s11_s20 }
   0x3   :  { %p575_p0 = scmp.ne.s32.totalorder %s11_s20, %s574_s21  ;;  %p580_p2 = scmp.lt.s32.totalorder %s574_s21, %s574_s21 }
   0x5   :  { %p581_p3 = por %p580_p2, %p579_p1 }
   0x7   :  { %p582_p4 = pnand %p581_p3, %p575_p0 }
   0x9   :  { %585 = shalt.err (!%p582_p4)  }
   0xa   :  { %s596_s22 = smov [#allocation3]  }
   0xb   :  { %13 = dma.vmem_to_smem %s11_s20, 64, %s596_s22, [#allocation2] }
   0xc   :  { %590 = dma.done.wait [#allocation2], 64 }
   0xd   :  { %591 = vsyncadd [#allocation2], 4294967232 }
   0xe   :  { %15 = sfence }
   0xf   :  { %s630_s23 = smov 0  }
  0x10 LB: > { %s636_s0 = sadd.s32 4294967295, %s594_s23   ;;  %p533_p5 = scmp.ge.s32.totalorder %s594_s23, 1  ;;  %s594_s23 = sphi %s630_s23, %s21_s23  }
  0x11   : > { %p231_p6 = scmp.lt.s32.totalorder %s594_s23, 5 }
  0x13   : > { %p232_p7 = pnand %p533_p5, %p231_p6 }
  0x14   : > { %p279_p8 = scmp.lt.s32.totalorder (!%p232_p7), %s636_s0, 11  ;;  %s538_s24 = sshll.u32 (!%p232_p7), %s636_s0, 7  ;;  %vm338_vm2 = vcmask (!%p232_p7), 1043456  }
  0x15   : > { %235 = sbr.rel (%p232_p7) target bundleno = 241 (0xf1), region = 36  ;;  %s292_s25 = sld [smem:[#allocation3 + %s538_s24]] (!%p232_p7) }
  0x16   : > { %s303_s26 = sadd.s32 (!%p232_p7), 1, %s538_s24  ;;  %s284_s29 = sadd.s32 (!%p232_p7), 4, %s636_s0 }
  0x17   : > { %s304_s28 = sld [smem:[#allocation3 + %s303_s26]] (!%p232_p7)  ;;  %p285_p9 = scmp.lt.s32.totalorder (!%p232_p7), %s284_s29, 11 }
  0x18   : > { %p315_p12 = scmp.lt.s32.totalorder (!%p232_p7), %s636_s0, 3 }
  0x1b   : > { %s293_s9 = sadd.s32 (!%p232_p7), 8, %s292_s25 }
  0x1c   : > { %s280_s27 = scalar_select %p279_p8, %s636_s0, 11 }
  0x1d   : > { %s677_s29 = smov (!%p285_p9, %s284_s29), 11  ;;  %p294_p10 = scmp.lt.s32.totalorder %s293_s9, 11 }
  0x1e   : > { %s551_s30 = sshll.u32 %s280_s27, 4  ;;  %s552_s10 = sshll.u32 %s677_s29, 4 }
  0x1f   : > { %s283_s8 = scalar_lea.vmem %s671_s1, %s551_s30  ;;  %s305_s11 = sadd.s32 8, %s304_s28 }
  0x20   : > { %v319_v0 = vld [vmem:[%s283_s8] sm:$0xff]  ;;  %s289_s14 = scalar_lea.vmem %s672_s2, %s552_s10  ;;  %s679_s9 = smov (!%p294_p10, %s293_s9), 11  ;;  %v320_v1 = vld [vmem:[%s283_s8 + $0x8] sm:$0xff] }
  0x21   : > { %v321_v2 = vld [vmem:[%s289_s14] sm:$0xff]  ;;  %v322_v3 = vld [vmem:[%s289_s14 + $0x8] sm:$0xff]  ;;  %p306_p11 = scmp.lt.s32.totalorder %s305_s11, 11  ;;  %s553_s15 = sshll.u32 %s679_s9, 4 }
  0x22   : > { %v323_v4 = vsub.f32 %v319_v0, %v321_v2  ;;  %v324_v5 = vsub.f32 %v320_v1, %v322_v3  ;;  %s298_s18 = scalar_lea.vmem %s673_s3, %s553_s15  ;;  %s683_s0 = smov (!%p315_p12, %s636_s0), 3 }
  0x23   : > { %v357_v8 = vld [vmem:[%s298_s18] sm:$0xff]  ;;  %v358_v9 = vld [vmem:[%s298_s18 + $0x8] sm:$0xff]  ;;  %s681_s11 = smov (!%p306_p11, %s305_s11), 11  ;;  %s544_s24 = sshll.u32 %s683_s0, 3 }
  0x24   : > { %v325_v6 = vmul.f32 %v323_v4, %v323_v4  ;;  %v326_v7 = vmul.f32 %v324_v5, %v324_v5  ;;  %v359_v10 = vsub.f32 %v319_v0, %v357_v8  ;;  %v360_v11 = vsub.f32 %v320_v1, %v358_v9  ;;  %s554_s19 = sshll.u32 %s681_s11, 4  ;;  %s318_s27 = scalar_lea.vmem %s675_s5, %s544_s24 }
  0x25   : > { %s310_s22 = scalar_lea.vmem %s674_s4, %s554_s19 }
  0x26   : > { %v327_v12 = vadd.f32 %v326_v7, %v325_v6  ;;  %v361_v13 = vmul.f32 %v359_v10, %v359_v10  ;;  %v362_v14 = vmul.f32 %v360_v11, %v360_v11  ;;  %v396_v15 = vld [vmem:[%s310_s22] sm:$0xff]  ;;  %v397_v16 = vld [vmem:[%s310_s22 + $0x8] sm:$0xff] }
  0x27   : > { %v398_v18 = vsub.f32 %v319_v0, %v396_v15  ;;  %v399_v19 = vsub.f32 %v320_v1, %v397_v16 }
  0x28   : > { %564 = vrsqrt.f32 %v327_v12  ;;  %v363_v17 = vadd.f32 %v362_v14, %v361_v13  ;;  %vm330_vm0 = vcmp.eq.f32.partialorder %v327_v12, inf  ;;  %v333_v24 = vand.u32 2147483648, %v327_v12 }
  0x29   : > { %v400_v20 = vmul.f32 %v398_v18, %v398_v18  ;;  %v401_v21 = vmul.f32 %v399_v19, %v399_v19  ;;  %vm332_vm1 = vcmp.eq.f32.partialorder %v327_v12, 0.0 }
  0x2a   : > { %566 = vrsqrt.f32 %v363_v17  ;;  %vm366_vm3 = vcmp.eq.f32.partialorder %v363_v17, inf  ;;  %v369_v28 = vand.u32 2147483648, %v363_v17  ;;  %vm368_vm4 = vcmp.eq.f32.partialorder %v363_v17, 0.0 }
  0x2b   : > { %v402_v22 = vadd.f32 %v401_v21, %v400_v20 }
  0x2d   : > { %568 = vrsqrt.f32 %v402_v22  ;;  %vm405_vm5 = vcmp.eq.f32.partialorder %v402_v22, inf  ;;  %vm407_vm6 = vcmp.eq.f32.partialorder %v402_v22, 0.0  ;;  %v408_v42 = vand.u32 2147483648, %v402_v22 }
  0x32   : > { %v565_v23 = vpop.eup %564 }
  0x33   : > { %v329_v25 = vmul.f32 %v565_v23, %v327_v12 }
  0x34   : > { %v567_v27 = vpop.eup %566 }
  0x35   : > { %v331_v26 = vsel %vm330_vm0, %v327_v12, %v329_v25  ;;  %v365_v30 = vmul.f32 %v567_v27, %v363_v17 }
  0x36   : > { %v334_v29 = vsel %vm332_vm1, %v333_v24, %v331_v26 }
  0x37   : > { %v336_v31 = vcombine.high %v334_v29, %v334_v29  ;;  %v339_v32 = vsel %vm338_vm2, %v334_v29, 0.0  ;;  %v367_v34 = vsel %vm366_vm3, %v363_v17, %v365_v30  ;;  %v569_v39 = vpop.eup %568 }
  0x38   : > { %v340_v33 = vrot.slane %v339_v32, 4  ;;  %v370_v36 = vsel %vm368_vm4, %v369_v28, %v367_v34  ;;  %v404_v44 = vmul.f32 %v569_v39, %v402_v22 }
  0x39   : > { %v346_v35 = vsel %vm338_vm2, %v336_v31, 0.0  ;;  %v372_v40 = vcombine.high %v370_v36, %v370_v36  ;;  %v374_v41 = vsel %vm338_vm2, %v370_v36, 0.0 }
  0x3a   : > { %v341_v37 = vadd.f32 %v340_v33, %v339_v32  ;;  %v347_v38 = vrot.slane %v346_v35, 4  ;;  %v375_v43 = vrot.slane %v374_v41, 4  ;;  %v406_v50 = vsel %vm405_vm5, %v402_v22, %v404_v44 }
  0x3b   : > { %v381_v47 = vsel %vm338_vm2, %v372_v40, 0.0  ;;  %v409_v52 = vsel %vm407_vm6, %v408_v42, %v406_v50 }
  0x3c   : > { %v342_v45 = vrot.slane %v341_v37, 2  ;;  %v348_v46 = vadd.f32 %v347_v38, %v346_v35  ;;  %v376_v48 = vadd.f32 %v375_v43, %v374_v41  ;;  %v382_v49 = vrot.slane %v381_v47, 4 }
  0x3d   : > { %v411_v56 = vcombine.high %v409_v52, %v409_v52  ;;  %v413_v57 = vsel %vm338_vm2, %v409_v52, 0.0 }
  0x3e   : > { %v343_v51 = vadd.f32 %v342_v45, %v341_v37  ;;  %v349_v53 = vrot.slane %v348_v46, 2  ;;  %v377_v54 = vrot.slane %v376_v48, 2  ;;  %v383_v55 = vadd.f32 %v382_v49, %v381_v47 }
  0x3f   : > { %v414_v58 = vrot.slane %v413_v57, 4  ;;  %v420_v63 = vsel %vm338_vm2, %v411_v56, 0.0 }
  0x40   : > { %v344_v59 = vrot.slane %v343_v51, 1  ;;  %v350_v60 = vadd.f32 %v349_v53, %v348_v46  ;;  %v378_v61 = vadd.f32 %v377_v54, %v376_v48  ;;  %v384_v62 = vrot.slane %v383_v55, 2 }
  0x41   : > { %v415_v0 = vadd.f32 %v414_v58, %v413_v57  ;;  %v421_v1 = vrot.slane %v420_v63, 4 }
  0x42   : > { %v345_v2 = vadd.f32 %v344_v59, %v343_v51  ;;  %v351_v3 = vrot.slane %v350_v60, 1  ;;  %v379_v4 = vrot.slane %v378_v61, 1  ;;  %v385_v5 = vadd.f32 %v384_v62, %v383_v55 }
  0x43   : > { %v416_v6 = vrot.slane %v415_v0, 2  ;;  %v422_v7 = vadd.f32 %v421_v1, %v420_v63 }
  0x44   : > { %v352_v8 = vadd.f32 %v351_v3, %v350_v60  ;;  %v380_v9 = vadd.f32 %v379_v4, %v378_v61  ;;  %v386_v10 = vrot.slane %v385_v5, 1 }
  0x45   : > { %v417_v11 = vadd.f32 %v416_v6, %v415_v0  ;;  %v423_v12 = vrot.slane %v422_v7, 2 }
  0x46   : > { %v353_v13 = vadd.f32 %v352_v8, %v345_v2  ;;  %v387_v14 = vadd.f32 %v386_v10, %v385_v5 }
  0x47   : > { %v418_v15 = vrot.slane %v417_v11, 1  ;;  %v424_v16 = vadd.f32 %v423_v12, %v422_v7 }
  0x48   : > { %354 = vadd.xlane.f32.xlu1 %v353_v13  ;;  %v388_v17 = vadd.f32 %v387_v14, %v380_v9 }
  0x49   : > { %v419_v18 = vadd.f32 %v418_v15, %v417_v11  ;;  %v425_v19 = vrot.slane %v424_v16, 1 }
  0x4a   : > { %389 = vadd.xlane.f32.xlu0 %v388_v17 }
  0x4b   : > { %v426_v20 = vadd.f32 %v425_v19, %v424_v16 }
  0x4d   : > { %v427_v21 = vadd.f32 %v426_v20, %v419_v18 }
  0x4f   : > { %428 = vadd.xlane.f32.xlu0 %v427_v21 }
  0xd5   : > { %v355_v28 = vpop.xlane.xlu1 %354 }
  0xd6   : > { %v356_v29 = vmul.f32 0.0009765625, %v355_v28 }
  0xd7   : > { %v390_v22 = vpop.xlane.xlu0 %389 }
  0xd8   : > { %v391_v23 = vmul.f32 0.0009765625, %v390_v22 }
  0xda   : > { %v392_v24 = vadd.f32 1e-07, %v391_v23 }
  0xdc   : > { %v429_v25 = vpop.xlane.xlu0 %428  ;;  %570 = vrcp.f32 %v392_v24 }
  0xdd   : > { %v430_v26 = vmul.f32 0.0009765625, %v429_v25 }
  0xdf   : > { %v431_v27 = vadd.f32 1e-07, %v430_v26 }
  0xe1   : > { %572 = vrcp.f32 %v431_v27 }
  0xe6   : > { %v571_v30 = vpop.eup %570 }
  0xe7   : > { %v394_v32 = vmul.f32 %v571_v30, %v356_v29 }
  0xeb   : > { %v573_v31 = vpop.eup %572 }
  0xec   : > { %v433_v33 = vmul.f32 %v573_v31, %v356_v29 }
  0xee   : > { %v434_v34 = vadd.f32 %v433_v33, %v394_v32 }
  0xf0   : > { %435 = vst [vmem:[%s318_s27] sm:$0xff] %v434_v34 }
  0xf1 PF: > { %s21_s23 = sadd.s32 1, %s594_s23  }
  0xf2   : > { %p18_p13 = scmp.ge.s32.totalorder %s21_s23, 6  }
  0xf4   :  { %20 = sbr.rel (!%p18_p13) target bundleno = 16 (0x10), region = 75 }

// kernel: _fcr_jit.2
= control target key start
LH: loop header
LB: loop body
LE: loop exit
PB: predicated region body
PF: predicated region fallthrough
CT: control target
= control target key end

     0   :  { %vm725_vm0 = vcmask 1043456   ;;  %s2609_s1 = inlined_call_operand.vmem [shape: bf16[256,512], index: 1, kind: input, shape index: {}]   ;;  %s2610_s0 = inlined_call_operand.vmem [shape: bf16[48,256], index: 0, kind: input, shape index: {}]   ;;  %s2611_s2 = inlined_call_operand.vmem [shape: f32[12,4,512], index: 2, kind: output, shape index: {}]  }
   0x1   :  { %v1592_v0 = vld [vmem:[%s2609_s1 + $0x4] ss:$16 sps:$4 sm:$0xff]   ;;  %v1594_v1 = vld [vmem:[%s2609_s1 + $0xc] ss:$16 sps:$4 sm:$0xff]   ;;  %v1596_v2 = vld [vmem:[%s2609_s1] ss:$16 sps:$4 sm:$0xff]  }
   0x2   :  { %431 = vmatprep.subr.bf16.mxu0 %v1592_v0  ;;  %v1597_v3 = vld [vmem:[%s2609_s1 + $0x8] ss:$16 sps:$4 sm:$0xff]   ;;  %494 = vmatprep.subr.bf16.mxu1 %v1594_v1  ;;  %v1598_v4 = vld [vmem:[%s2609_s1 + $0x24] ss:$16 sps:$4 sm:$0xff]   ;;  %v1600_v5 = vld [vmem:[%s2609_s1 + $0x2c] ss:$16 sps:$4 sm:$0xff]  }
   0x3   :  { %432 = vmatpush1.bf16.msra.mxu0 %v1596_v2  ;;  %495 = vmatpush1.bf16.msra.mxu1 %v1597_v3  ;;  %v1602_v6 = vld [vmem:[%s2609_s1 + $0x20] ss:$16 sps:$4 sm:$0xff]   ;;  %v1603_v7 = vld [vmem:[%s2609_s1 + $0x28] ss:$16 sps:$4 sm:$0xff]   ;;  %v1604_v8 = vld [vmem:[%s2609_s1 + $0x44] ss:$16 sps:$4 sm:$0xff]  }
   0x4   :  { %433 = vmatprep.subr.bf16.mxu0 %v1598_v4  ;;  %496 = vmatprep.subr.bf16.mxu1 %v1600_v5  ;;  %v1606_v9 = vld [vmem:[%s2609_s1 + $0x4c] ss:$16 sps:$4 sm:$0xff]   ;;  %v1608_v10 = vld [vmem:[%s2609_s1 + $0x40] ss:$16 sps:$4 sm:$0xff]   ;;  %v1609_v11 = vld [vmem:[%s2609_s1 + $0x48] ss:$16 sps:$4 sm:$0xff]  }
   0x5   :  { %v1610_v12 = vld [vmem:[%s2609_s1 + $0x64] ss:$16 sps:$4 sm:$0xff]   ;;  %v1612_v13 = vld [vmem:[%s2609_s1 + $0x6c] ss:$16 sps:$4 sm:$0xff]   ;;  %v1614_v14 = vld [vmem:[%s2609_s1 + $0x60] ss:$16 sps:$4 sm:$0xff]  }
   0x6   :  { %v1615_v15 = vld [vmem:[%s2609_s1 + $0x68] ss:$16 sps:$4 sm:$0xff]   ;;  %v1616_v16 = vld [vmem:[%s2609_s1 + $0x84] ss:$16 sps:$4 sm:$0xff]   ;;  %v1618_v17 = vld [vmem:[%s2609_s1 + $0x8c] ss:$16 sps:$4 sm:$0xff]  }
   0x7   :  { %434 = vmatpush1.bf16.msra.mxu0 %v1602_v6  ;;  %497 = vmatpush1.bf16.msra.mxu1 %v1603_v7  ;;  %v1620_v18 = vld [vmem:[%s2609_s1 + $0x80] ss:$16 sps:$4 sm:$0xff]   ;;  %v1621_v19 = vld [vmem:[%s2609_s1 + $0x88] ss:$16 sps:$4 sm:$0xff]   ;;  %v1622_v20 = vld [vmem:[%s2609_s1 + $0xa4] ss:$16 sps:$4 sm:$0xff]  }
   0x8   :  { %435 = vmatprep.subr.bf16.mxu0 %v1604_v8  ;;  %498 = vmatprep.subr.bf16.mxu1 %v1606_v9  ;;  %v1624_v21 = vld [vmem:[%s2609_s1 + $0xac] ss:$16 sps:$4 sm:$0xff]   ;;  %v1626_v22 = vld [vmem:[%s2609_s1 + $0xa0] ss:$16 sps:$4 sm:$0xff]   ;;  %v1627_v23 = vld [vmem:[%s2609_s1 + $0xa8] ss:$16 sps:$4 sm:$0xff]  }
   0x9   :  { %v1628_v24 = vld [vmem:[%s2609_s1 + $0xc4] ss:$16 sps:$4 sm:$0xff]   ;;  %v1630_v25 = vld [vmem:[%s2609_s1 + $0xcc] ss:$16 sps:$4 sm:$0xff]   ;;  %v1632_v26 = vld [vmem:[%s2609_s1 + $0xc0] ss:$16 sps:$4 sm:$0xff]  }
   0xa   :  { %v1633_v27 = vld [vmem:[%s2609_s1 + $0xc8] ss:$16 sps:$4 sm:$0xff]   ;;  %v1634_v28 = vld [vmem:[%s2609_s1 + $0xe4] ss:$16 sps:$4 sm:$0xff]   ;;  %v1636_v29 = vld [vmem:[%s2609_s1 + $0xec] ss:$16 sps:$4 sm:$0xff]  }
   0xb   :  { %436 = vmatpush1.bf16.msra.mxu0 %v1608_v10  ;;  %499 = vmatpush1.bf16.msra.mxu1 %v1609_v11  ;;  %v1638_v30 = vld [vmem:[%s2609_s1 + $0xe0] ss:$16 sps:$4 sm:$0xff]   ;;  %v1639_v31 = vld [vmem:[%s2609_s1 + $0xe8] ss:$16 sps:$4 sm:$0xff]   ;;  %v1640_v32 = vld [vmem:[%s2609_s1 + $0x104] ss:$16 sps:$4 sm:$0xff]  }
   0xc   :  { %437 = vmatprep.subr.bf16.mxu0 %v1610_v12  ;;  %500 = vmatprep.subr.bf16.mxu1 %v1612_v13  ;;  %v1642_v33 = vld [vmem:[%s2609_s1 + $0x10c] ss:$16 sps:$4 sm:$0xff]   ;;  %v1644_v34 = vld [vmem:[%s2609_s1 + $0x100] ss:$16 sps:$4 sm:$0xff]   ;;  %v1645_v35 = vld [vmem:[%s2609_s1 + $0x108] ss:$16 sps:$4 sm:$0xff]  }
   0xd   :  { %v1646_v36 = vld [vmem:[%s2609_s1 + $0x124] ss:$16 sps:$4 sm:$0xff]   ;;  %v1648_v37 = vld [vmem:[%s2609_s1 + $0x12c] ss:$16 sps:$4 sm:$0xff]   ;;  %v1650_v38 = vld [vmem:[%s2609_s1 + $0x120] ss:$16 sps:$4 sm:$0xff]  }
   0xe   :  { %v1651_v39 = vld [vmem:[%s2609_s1 + $0x128] ss:$16 sps:$4 sm:$0xff]   ;;  %v1652_v40 = vld [vmem:[%s2609_s1 + $0x144] ss:$16 sps:$4 sm:$0xff]   ;;  %v1654_v41 = vld [vmem:[%s2609_s1 + $0x14c] ss:$16 sps:$4 sm:$0xff]  }
   0xf   :  { %438 = vmatpush1.bf16.msra.mxu0 %v1614_v14  ;;  %501 = vmatpush1.bf16.msra.mxu1 %v1615_v15  ;;  %v1656_v42 = vld [vmem:[%s2609_s1 + $0x140] ss:$16 sps:$4 sm:$0xff]   ;;  %v1657_v43 = vld [vmem:[%s2609_s1 + $0x148] ss:$16 sps:$4 sm:$0xff]   ;;  %v1658_v44 = vld [vmem:[%s2609_s1 + $0x164] ss:$16 sps:$4 sm:$0xff]  }
  0x10   :  { %439 = vmatprep.subr.bf16.mxu0 %v1616_v16  ;;  %502 = vmatprep.subr.bf16.mxu1 %v1618_v17  ;;  %v1660_v45 = vld [vmem:[%s2609_s1 + $0x16c] ss:$16 sps:$4 sm:$0xff]   ;;  %v1662_v46 = vld [vmem:[%s2609_s1 + $0x160] ss:$16 sps:$4 sm:$0xff]   ;;  %v1663_v47 = vld [vmem:[%s2609_s1 + $0x168] ss:$16 sps:$4 sm:$0xff]  }
  0x11   :  { %v1690_v48 = vld [vmem:[%s2610_s0 + $0x4] ss:$8 sps:$4 sm:$0xff]   ;;  %v1668_v51 = vld [vmem:[%s2609_s1 + $0x180] ss:$16 sps:$4 sm:$0xff]   ;;  %v1669_v52 = vld [vmem:[%s2609_s1 + $0x188] ss:$16 sps:$4 sm:$0xff]  }
  0x12   :  { %v1664_v49 = vld [vmem:[%s2609_s1 + $0x184] ss:$16 sps:$4 sm:$0xff]   ;;  %v1666_v50 = vld [vmem:[%s2609_s1 + $0x18c] ss:$16 sps:$4 sm:$0xff]   ;;  %463 = vmatprep.mubr.bf16.mxu0 %v1690_v48  ;;  %526 = vmatprep.mubr.bf16.mxu1 %v1690_v48  ;;  %v1674_v55 = vld [vmem:[%s2609_s1 + $0x1a0] ss:$16 sps:$4 sm:$0xff]  }
  0x13   :  { %440 = vmatpush1.bf16.msra.mxu0 %v1620_v18  ;;  %503 = vmatpush1.bf16.msra.mxu1 %v1621_v19  ;;  %v1670_v53 = vld [vmem:[%s2609_s1 + $0x1a4] ss:$16 sps:$4 sm:$0xff]   ;;  %v1672_v54 = vld [vmem:[%s2609_s1 + $0x1ac] ss:$16 sps:$4 sm:$0xff]   ;;  %v1675_v56 = vld [vmem:[%s2609_s1 + $0x1a8] ss:$16 sps:$4 sm:$0xff]  }
  0x14   :  { %441 = vmatprep.subr.bf16.mxu0 %v1622_v20  ;;  %504 = vmatprep.subr.bf16.mxu1 %v1624_v21  ;;  %v1676_v57 = vld [vmem:[%s2609_s1 + $0x1c4] ss:$16 sps:$4 sm:$0xff]   ;;  %v1678_v58 = vld [vmem:[%s2609_s1 + $0x1cc] ss:$16 sps:$4 sm:$0xff]   ;;  %v1680_v59 = vld [vmem:[%s2609_s1 + $0x1c0] ss:$16 sps:$4 sm:$0xff]  }
  0x15   :  { %v1681_v60 = vld [vmem:[%s2609_s1 + $0x1c8] ss:$16 sps:$4 sm:$0xff]   ;;  %v1682_v61 = vld [vmem:[%s2609_s1 + $0x1e4] ss:$16 sps:$4 sm:$0xff]   ;;  %v1684_v62 = vld [vmem:[%s2609_s1 + $0x1ec] ss:$16 sps:$4 sm:$0xff]  }
  0x16   :  { %v1686_v63 = vld [vmem:[%s2609_s1 + $0x1e0] ss:$16 sps:$4 sm:$0xff]   ;;  %v1687_v0 = vld [vmem:[%s2609_s1 + $0x1e8] ss:$16 sps:$4 sm:$0xff]   ;;  %v1691_v2 = vld [vmem:[%s2610_s0 + $0x14] ss:$8 sps:$4 sm:$0xff]  }
  0x17   :  { %442 = vmatpush1.bf16.msra.mxu0 %v1626_v22  ;;  %505 = vmatpush1.bf16.msra.mxu1 %v1627_v23  ;;  %v1688_v1 = vld [vmem:[%s2610_s0] ss:$8 sps:$4 sm:$0xff]   ;;  %v1693_v3 = vld [vmem:[%s2610_s0 + $0x10] ss:$8 sps:$4 sm:$0xff]   ;;  %v1694_v4 = vld [vmem:[%s2610_s0 + $0x24] ss:$8 sps:$4 sm:$0xff]  }
  0x18   :  { %443 = vmatprep.subr.bf16.mxu0 %v1628_v24  ;;  %506 = vmatprep.subr.bf16.mxu1 %v1630_v25  ;;  %v1696_v5 = vld [vmem:[%s2610_s0 + $0x20] ss:$8 sps:$4 sm:$0xff]  }
  0x1b   :  { %444 = vmatpush1.bf16.msra.mxu0 %v1632_v26  ;;  %507 = vmatpush1.bf16.msra.mxu1 %v1633_v27 }
  0x1c   :  { %445 = vmatprep.subr.bf16.mxu0 %v1634_v28  ;;  %508 = vmatprep.subr.bf16.mxu1 %v1636_v29 }
  0x1f   :  { %446 = vmatpush1.bf16.msra.mxu0 %v1638_v30  ;;  %509 = vmatpush1.bf16.msra.mxu1 %v1639_v31 }
  0x20   :  { %447 = vmatprep.subr.bf16.mxu0 %v1640_v32  ;;  %510 = vmatprep.subr.bf16.mxu1 %v1642_v33 }
  0x23   :  { %448 = vmatpush1.bf16.msra.mxu0 %v1644_v34  ;;  %511 = vmatpush1.bf16.msra.mxu1 %v1645_v35 }
  0x24   :  { %449 = vmatprep.subr.bf16.mxu0 %v1646_v36  ;;  %512 = vmatprep.subr.bf16.mxu1 %v1648_v37 }
  0x27   :  { %450 = vmatpush1.bf16.msra.mxu0 %v1650_v38  ;;  %513 = vmatpush1.bf16.msra.mxu1 %v1651_v39 }
  0x28   :  { %451 = vmatprep.subr.bf16.mxu0 %v1652_v40  ;;  %514 = vmatprep.subr.bf16.mxu1 %v1654_v41 }
  0x2b   :  { %452 = vmatpush1.bf16.msra.mxu0 %v1656_v42  ;;  %515 = vmatpush1.bf16.msra.mxu1 %v1657_v43 }
  0x2c   :  { %453 = vmatprep.subr.bf16.mxu0 %v1658_v44  ;;  %516 = vmatprep.subr.bf16.mxu1 %v1660_v45 }
  0x2f   :  { %454 = vmatpush1.bf16.msra.mxu0 %v1662_v46  ;;  %517 = vmatpush1.bf16.msra.mxu1 %v1663_v47 }
  0x30   :  { %455 = vmatprep.subr.bf16.mxu0 %v1664_v49  ;;  %518 = vmatprep.subr.bf16.mxu1 %v1666_v50 }
  0x33   :  { %456 = vmatpush1.bf16.msra.mxu0 %v1668_v51  ;;  %519 = vmatpush1.bf16.msra.mxu1 %v1669_v52 }
  0x34   :  { %457 = vmatprep.subr.bf16.mxu0 %v1670_v53  ;;  %520 = vmatprep.subr.bf16.mxu1 %v1672_v54 }
  0x37   :  { %458 = vmatpush1.bf16.msra.mxu0 %v1674_v55  ;;  %521 = vmatpush1.bf16.msra.mxu1 %v1675_v56 }
  0x38   :  { %459 = vmatprep.subr.bf16.mxu0 %v1676_v57  ;;  %522 = vmatprep.subr.bf16.mxu1 %v1678_v58 }
  0x3b   :  { %460 = vmatpush1.bf16.msra.mxu0 %v1680_v59  ;;  %523 = vmatpush1.bf16.msra.mxu1 %v1681_v60 }
  0x3c   :  { %461 = vmatprep.subr.bf16.mxu0 %v1682_v61  ;;  %524 = vmatprep.subr.bf16.mxu1 %v1684_v62 }
  0x3f   :  { %462 = vmatpush1.bf16.msra.mxu0 %v1686_v63  ;;  %525 = vmatpush1.bf16.msra.mxu1 %v1687_v0 }
  0x42   :  { %464 = vmatmul.mubr.bf16.vlgmr.msra.gmra.mrb[0].mxu0 %v1688_v1  ;;  %527 = vmatmul.mubr.bf16.vlgmr.msra.gmra.mrb[0].mxu1 %v1688_v1 }
  0x43   :  { %473 = vmatprep.mubr.bf16.mxu0 %v1691_v2  ;;  %536 = vmatprep.mubr.bf16.mxu1 %v1691_v2 }
  0x4a   :  { %474 = vmatmul.mubr.bf16.gmra.mrb[4].mxu0 %v1693_v3  ;;  %537 = vmatmul.mubr.bf16.gmra.mrb[4].mxu1 %v1693_v3 }
  0x4b   :  { %483 = vmatprep.mubr.bf16.mxu0 %v1694_v4  ;;  %546 = vmatprep.mubr.bf16.mxu1 %v1694_v4 }
  0x52   :  { %484 = vmatmul.mubr.bf16.gmra.mrb[8].mxu0 %v1696_v5  ;;  %547 = vmatmul.mubr.bf16.gmra.mrb[8].mxu1 %v1696_v5 }
 0x115   :  { %v465_v6 = vpop.f32.mrb[0].mxu0  ;;  %v528_v7 = vpop.f32.mrb[0].mxu1 }
 0x116   :  { %v467_v8 = vpop.f32.mrb[1].mxu0  ;;  %v530_v9 = vpop.f32.mrb[1].mxu1 }
 0x117   :  { %v2018_v10 = vcombine.low %v465_v6, %v467_v8  ;;  %v2020_v11 = vcombine.high %v465_v6, %v467_v8  ;;  %v2022_v12 = vcombine.low %v528_v7, %v530_v9  ;;  %v2024_v13 = vcombine.high %v528_v7, %v530_v9  ;;  %v469_v14 = vpop.f32.mrb[2].mxu0  ;;  %v532_v15 = vpop.f32.mrb[2].mxu1 }
 0x118   :  { %v471_v16 = vpop.f32.mrb[3].mxu0  ;;  %v534_v17 = vpop.f32.mrb[3].mxu1 }
 0x119   :  { %v629_v18 = vmul.f32 %v2018_v10, %v2018_v10  ;;  %v631_v19 = vmul.f32 %v2020_v11, %v2020_v11  ;;  %v630_v20 = vmul.f32 %v2022_v12, %v2022_v12  ;;  %v632_v21 = vmul.f32 %v2024_v13, %v2024_v13 }
 0x11a   :  { %v2034_v22 = vcombine.low %v469_v14, %v471_v16  ;;  %v2036_v23 = vcombine.high %v469_v14, %v471_v16  ;;  %v2038_v24 = vcombine.low %v532_v15, %v534_v17  ;;  %v2040_v25 = vcombine.high %v532_v15, %v534_v17 }
 0x11b   :  { %v677_v26 = vcombine.high %v629_v18, %v629_v18  ;;  %v679_v27 = vcombine.high %v631_v19, %v631_v19  ;;  %v726_v28 = vsel %vm725_vm0, %v629_v18, 0.0  ;;  %v754_v29 = vsel %vm725_vm0, %v631_v19, 0.0 }
 0x11c   :  { %v727_v30 = vrot.slane %v726_v28, 4  ;;  %v755_v31 = vrot.slane %v754_v29, 4  ;;  %v678_v32 = vcombine.high %v630_v20, %v630_v20  ;;  %v680_v33 = vcombine.high %v632_v21, %v632_v21 }
 0x11d   :  { %v733_v34 = vsel %vm725_vm0, %v677_v26, 0.0  ;;  %v761_v35 = vsel %vm725_vm0, %v679_v27, 0.0  ;;  %v740_v36 = vsel %vm725_vm0, %v630_v20, 0.0  ;;  %v768_v37 = vsel %vm725_vm0, %v632_v21, 0.0  ;;  %v2048_v38 = vpop.f32.mrb[4].mxu0  ;;  %v2050_v39 = vpop.f32.mrb[4].mxu1 }
 0x11e   :  { %v728_v40 = vadd.f32 %v727_v30, %v726_v28  ;;  %v734_v41 = vrot.slane %v733_v34, 4  ;;  %v756_v42 = vadd.f32 %v755_v31, %v754_v29  ;;  %v762_v43 = vrot.slane %v761_v35, 4  ;;  %v2052_v44 = vpop.f32.mrb[5].mxu0  ;;  %v2054_v45 = vpop.f32.mrb[5].mxu1 }
 0x11f   :  { %v741_v46 = vrot.slane %v740_v36, 4  ;;  %v747_v47 = vsel %vm725_vm0, %v678_v32, 0.0  ;;  %v769_v48 = vrot.slane %v768_v37, 4  ;;  %v775_v49 = vsel %vm725_vm0, %v680_v33, 0.0  ;;  %v2058_v50 = vpop.f32.mrb[6].mxu0  ;;  %v2060_v51 = vpop.f32.mrb[6].mxu1 }
 0x120   :  { %v729_v52 = vrot.slane %v728_v40, 2  ;;  %v735_v53 = vadd.f32 %v734_v41, %v733_v34  ;;  %v757_v54 = vrot.slane %v756_v42, 2  ;;  %v763_v55 = vadd.f32 %v762_v43, %v761_v35  ;;  %v2062_v56 = vpop.f32.mrb[7].mxu0  ;;  %v2064_v57 = vpop.f32.mrb[7].mxu1 }
 0x121   :  { %v742_v58 = vadd.f32 %v741_v46, %v740_v36  ;;  %v748_v59 = vrot.slane %v747_v47, 4  ;;  %v770_v60 = vadd.f32 %v769_v48, %v768_v37  ;;  %v776_v61 = vrot.slane %v775_v49, 4 }
 0x122   :  { %v730_v62 = vadd.f32 %v729_v52, %v728_v40  ;;  %v736_v63 = vrot.slane %v735_v53, 2  ;;  %v758_v0 = vadd.f32 %v757_v54, %v756_v42  ;;  %v764_v1 = vrot.slane %v763_v55, 2 }
 0x123   :  { %v743_v2 = vrot.slane %v742_v58, 2  ;;  %v749_v3 = vadd.f32 %v748_v59, %v747_v47  ;;  %v771_v4 = vrot.slane %v770_v60, 2  ;;  %v777_v5 = vadd.f32 %v776_v61, %v775_v49 }
 0x124   :  { %v731_v6 = vrot.slane %v730_v62, 1  ;;  %v737_v7 = vadd.f32 %v736_v63, %v735_v53  ;;  %v759_v8 = vrot.slane %v758_v0, 1  ;;  %v765_v9 = vadd.f32 %v764_v1, %v763_v55 }
 0x125   :  { %v744_v14 = vadd.f32 %v743_v2, %v742_v58  ;;  %v750_v15 = vrot.slane %v749_v3, 2  ;;  %v772_v16 = vadd.f32 %v771_v4, %v770_v60  ;;  %v778_v17 = vrot.slane %v777_v5, 2  ;;  %v2066_v18 = vpop.f32.mrb[8].mxu0  ;;  %v2068_v19 = vpop.f32.mrb[8].mxu1 }
 0x126   :  { %v732_v20 = vadd.f32 %v731_v6, %v730_v62  ;;  %v738_v21 = vrot.slane %v737_v7, 1  ;;  %v760_v26 = vadd.f32 %v759_v8, %v758_v0  ;;  %v766_v27 = vrot.slane %v765_v9, 1  ;;  %v2070_v28 = vpop.f32.mrb[9].mxu0  ;;  %v2072_v29 = vpop.f32.mrb[9].mxu1 }
 0x127   :  { %v745_v30 = vrot.slane %v744_v14, 1  ;;  %v751_v31 = vadd.f32 %v750_v15, %v749_v3  ;;  %v773_v32 = vrot.slane %v772_v16, 1  ;;  %v779_v33 = vadd.f32 %v778_v17, %v777_v5  ;;  %v2074_v34 = vpop.f32.mrb[10].mxu0  ;;  %v2076_v35 = vpop.f32.mrb[10].mxu1 }
 0x128   :  { %v739_v36 = vadd.f32 %v738_v21, %v737_v7  ;;  %v767_v37 = vadd.f32 %v766_v27, %v765_v9  ;;  %v633_v40 = vmul.f32 %v2034_v22, %v2034_v22  ;;  %v635_v41 = vmul.f32 %v2036_v23, %v2036_v23  ;;  %v2082_v42 = vpop.f32.mrb[11].mxu0  ;;  %v2084_v43 = vpop.f32.mrb[11].mxu1 }
 0x129   :  { %v746_v46 = vadd.f32 %v745_v30, %v744_v14  ;;  %v752_v47 = vrot.slane %v751_v31, 1  ;;  %v774_v48 = vadd.f32 %v773_v32, %v772_v16  ;;  %v780_v49 = vrot.slane %v779_v33, 1 }
 0x12a   :  { %v681_v52 = vcombine.high %v633_v40, %v633_v40  ;;  %v683_v53 = vcombine.high %v635_v41, %v635_v41  ;;  %v782_v54 = vsel %vm725_vm0, %v633_v40, 0.0  ;;  %v810_v55 = vsel %vm725_vm0, %v635_v41, 0.0 }
 0x12b   :  { %v753_v58 = vadd.f32 %v752_v47, %v751_v31  ;;  %v781_v59 = vadd.f32 %v780_v49, %v779_v33  ;;  %v2088_v60 = vadd.f32 %v746_v46, %v732_v20  ;;  %v2090_v61 = vadd.f32 %v774_v48, %v760_v26 }
 0x12c   :  { %v783_v0 = vrot.slane %v782_v54, 4  ;;  %v789_v1 = vsel %vm725_vm0, %v681_v52, 0.0  ;;  %v811_v2 = vrot.slane %v810_v55, 4  ;;  %v817_v3 = vsel %vm725_vm0, %v683_v53, 0.0 }
 0x12d   :  { %v2092_v62 = vadd.f32 %v753_v58, %v739_v36  ;;  %v2094_v63 = vadd.f32 %v781_v59, %v767_v37  ;;  %1697 = vrsqrt.f32 %v2088_v60  ;;  %v1091_v4 = vand.u32 2147483648, %v2088_v60 }
 0x12e   :  { %1699 = vrsqrt.f32 %v2090_v61  ;;  %v1326_v5 = vlaneseq  ;;  %vm1088_vm1 = vcmp.eq.f32.partialorder %v2088_v60, inf  ;;  %v1105_v7 = vand.u32 2147483648, %v2090_v61 }
 0x12f   :  { %1701 = vrsqrt.f32 %v2092_v62  ;;  %v1098_v6 = vand.u32 2147483648, %v2092_v62  ;;  %v784_v8 = vadd.f32 %v783_v0, %v782_v54  ;;  %v790_v9 = vrot.slane %v789_v1, 4 }
 0x130   :  { %1703 = vrsqrt.f32 %v2094_v63  ;;  %vm1090_vm2 = vcmp.eq.f32.partialorder %v2088_v60, 0.0  ;;  %vm1102_vm3 = vcmp.eq.f32.partialorder %v2090_v61, inf  ;;  %v812_v14 = vadd.f32 %v811_v2, %v810_v55 }
 0x131   :  { %v818_v15 = vrot.slane %v817_v3, 4  ;;  %v634_v16 = vmul.f32 %v2038_v24, %v2038_v24  ;;  %v2112_v17 = vmul.f32 %v2040_v25, %v2040_v25  ;;  %vm1095_vm4 = vcmp.eq.f32.partialorder %v2092_v62, inf }
 0x132   :  { %vm1104_vm5 = vcmp.eq.f32.partialorder %v2090_v61, 0.0  ;;  %v785_v20 = vrot.slane %v784_v8, 2  ;;  %v791_v21 = vadd.f32 %v790_v9, %v789_v1  ;;  %v2118_v26 = vcombine.low %v2048_v38, %v2052_v44 }
 0x133   :  { %v2122_v27 = vcombine.high %v2048_v38, %v2052_v44  ;;  %vm1097_vm6 = vcmp.eq.f32.partialorder %v2092_v62, 0.0  ;;  %vm1109_vm7 = vcmp.eq.f32.partialorder %v2094_v63, inf  ;;  %v813_v30 = vrot.slane %v812_v14, 2 }
 0x134   :  { %v819_v31 = vadd.f32 %v818_v15, %v817_v3  ;;  %v682_v32 = vcombine.high %v634_v16, %v634_v16  ;;  %v786_v33 = vadd.f32 %v785_v20, %v784_v8  ;;  %v792_v36 = vrot.slane %v791_v21, 2 }
 0x135   :  { %v796_v37 = vsel %vm725_vm0, %v634_v16, 0.0  ;;  %v824_v40 = vsel %vm725_vm0, %v2112_v17, 0.0  ;;  %v814_v41 = vadd.f32 %v813_v30, %v812_v14  ;;  %vm1111_vm8 = vcmp.eq.f32.partialorder %v2094_v63, 0.0 }
 0x136   :  { %v820_v46 = vrot.slane %v819_v31, 2  ;;  %v797_v47 = vrot.slane %v796_v37, 4  ;;  %v803_v38 = vsel %vm725_vm0, %v682_v32, 0.0  ;;  %v787_v48 = vrot.slane %v786_v33, 1 }
 0x137   :  { %v1698_v44 = vpop.eup %1697  ;;  %v793_v49 = vadd.f32 %v792_v36, %v791_v21  ;;  %v804_v52 = vrot.slane %v803_v38, 4  ;;  %v1112_v55 = vand.u32 2147483648, %v2094_v63  ;;  %v684_v58 = vcombine.high %v2112_v17, %v2112_v17 }
 0x138   :  { %v1700_v53 = vpop.eup %1699  ;;  %v1087_v54 = vmul.f32 %v1698_v44, %v2088_v60  ;;  %v825_v59 = vrot.slane %v824_v40, 4  ;;  %v815_v3 = vrot.slane %v814_v41, 1  ;;  %v798_v8 = vadd.f32 %v797_v47, %v796_v37 }
 0x139   :  { %v1702_v0 = vpop.eup %1701  ;;  %v1101_v1 = vmul.f32 %v1700_v53, %v2090_v61  ;;  %v794_v2 = vrot.slane %v793_v49, 1  ;;  %v821_v16 = vadd.f32 %v820_v46, %v819_v31  ;;  %v805_v20 = vadd.f32 %v804_v52, %v803_v38 }
 0x13a   :  { %v1704_v9 = vpop.eup %1703  ;;  %v1089_v14 = vsel %vm1088_vm1, %v2088_v60, %v1087_v54  ;;  %v1094_v15 = vmul.f32 %v1702_v0, %v2092_v62  ;;  %v788_v32 = vadd.f32 %v787_v48, %v786_v33  ;;  %v799_v38 = vrot.slane %v798_v8, 2 }
 0x13b   :  { %v1092_v21 = vsel %vm1090_vm2, %v1091_v4, %v1089_v14  ;;  %v1103_v17 = vsel %vm1102_vm3, %v2090_v61, %v1101_v1  ;;  %v1108_v30 = vmul.f32 %v1704_v9, %v2094_v63  ;;  %v795_v31 = vadd.f32 %v794_v2, %v793_v49 }
 0x13c   :  { %v1096_v36 = vsel %vm1095_vm4, %v2092_v62, %v1094_v15  ;;  %v1106_v37 = vsel %vm1104_vm5, %v1105_v7, %v1103_v17  ;;  %v1254_v47 = vadd.f32 1e-08, %v1092_v21  ;;  %v806_v48 = vrot.slane %v805_v20, 2 }
 0x13d   :  { %v1099_v60 = vsel %vm1097_vm6, %v1098_v6, %v1096_v36  ;;  %v1110_v4 = vsel %vm1109_vm7, %v2094_v63, %v1108_v30  ;;  %v1256_v46 = vadd.f32 1e-08, %v1106_v37  ;;  %v800_v61 = vadd.f32 %v799_v38, %v798_v8 }
 0x13e   :  { %v1113_v33 = vsel %vm1111_vm8, %v1112_v55, %v1110_v4  ;;  %v1255_v44 = vadd.f32 1e-08, %v1099_v60  ;;  %1705 = vrcp.f32 %v1254_v47  ;;  %v826_v7 = vadd.f32 %v825_v59, %v824_v40 }
 0x13f   :  { %v1257_v52 = vadd.f32 1e-08, %v1113_v33  ;;  %1707 = vrcp.f32 %v1256_v46  ;;  %v807_v49 = vadd.f32 %v806_v48, %v805_v20  ;;  %v831_v62 = vsel %vm725_vm0, %v684_v58, 0.0 }
 0x140   :  { %1709 = vrcp.f32 %v1255_v44  ;;  %v637_v6 = vmul.f32 %v2118_v26, %v2118_v26  ;;  %v801_v53 = vrot.slane %v800_v61, 1  ;;  %v827_v54 = vrot.slane %v826_v7, 2 }
 0x141   :  { %1711 = vrcp.f32 %v1257_v52  ;;  %v832_v0 = vrot.slane %v831_v62, 4  ;;  %v808_v63 = vrot.slane %v807_v49, 1  ;;  %v639_v55 = vmul.f32 %v2122_v27, %v2122_v27 }
 0x142   :  { %v685_v1 = vcombine.high %v637_v6, %v637_v6  ;;  %v838_v2 = vsel %vm725_vm0, %v637_v6, 0.0  ;;  %v802_v8 = vadd.f32 %v801_v53, %v800_v61  ;;  %v828_v40 = vadd.f32 %v827_v54, %v826_v7 }
 0x143   :  { %v833_v59 = vadd.f32 %v832_v0, %v831_v62  ;;  %v839_v9 = vrot.slane %v838_v2, 4  ;;  %v1327_v58 = vshrl.u32 %v1326_v5, 7  ;;  %v816_v14 = vadd.f32 %v815_v3, %v814_v41 }
 0x144   :  { %v809_v15 = vadd.f32 %v808_v63, %v807_v49  ;;  %v845_v20 = vsel %vm725_vm0, %v685_v1, 0.0  ;;  %v822_v21 = vrot.slane %v821_v16, 1  ;;  %v829_v17 = vrot.slane %v828_v40, 1 }
 0x145   :  { %v834_v30 = vrot.slane %v833_v59, 2  ;;  %v2166_v36 = vadd.f32 %v802_v8, %v788_v32  ;;  %v687_v47 = vcombine.high %v639_v55, %v639_v55  ;;  %v840_v60 = vadd.f32 %v839_v9, %v838_v2 }
 0x146   :  { %v2168_v37 = vadd.f32 %v809_v15, %v795_v31  ;;  %v866_v4 = vsel %vm725_vm0, %v639_v55, 0.0  ;;  %v830_v46 = vadd.f32 %v829_v17, %v828_v40  ;;  %v846_v5 = vrot.slane %v845_v20, 4 }
 0x147   :  { %v835_v38 = vadd.f32 %v834_v30, %v833_v59  ;;  %1713 = vrsqrt.f32 %v2166_v36  ;;  %v2172_v3 = vsub.s32 0, %v1327_v58  ;;  %v823_v32 = vadd.f32 %v822_v21, %v821_v16 }
 0x148   :  { %v1706_v41 = vpop.eup %1705  ;;  %1715 = vrsqrt.f32 %v2168_v37  ;;  %v2175_v31 = vadd.f32 %v830_v46, %v816_v14  ;;  %v841_v7 = vrot.slane %v840_v60, 2  ;;  %v867_v49 = vrot.slane %v866_v4, 4 }
 0x149   :  { %v1708_v33 = vpop.eup %1707  ;;  %v1279_v44 = vmul.f32 0.01, %v1706_v41  ;;  %v836_v48 = vrot.slane %v835_v38, 1  ;;  %v873_v62 = vsel %vm725_vm0, %v687_v47, 0.0  ;;  %vm1116_vm9 = vcmp.eq.f32.partialorder %v2166_v36, inf }
 0x14a   :  { %v1710_v52 = vpop.eup %1709  ;;  %v1283_v61 = vmul.f32 0.01, %v1708_v33  ;;  %1717 = vrsqrt.f32 %v2175_v31  ;;  %v847_v0 = vadd.f32 %v846_v5, %v845_v20  ;;  %vm1118_vm10 = vcmp.eq.f32.partialorder %v2166_v36, 0.0 }
 0x14b   :  { %v1712_v6 = vpop.eup %1711  ;;  %v1281_v53 = vmul.f32 0.01, %v1710_v52  ;;  %v837_v54 = vadd.f32 %v836_v48, %v835_v38  ;;  %v1119_v16 = vand.u32 2147483648, %v2166_v36  ;;  %vm1123_vm11 = vcmp.eq.f32.partialorder %v2168_v37, inf }
 0x14c   :  { %v1285_v63 = vmul.f32 0.01, %v1712_v6  ;;  %v1329_v55 = vrot.slane %v1279_v44, %v2172_v3  ;;  %v842_v8 = vadd.f32 %v841_v7, %v840_v60  ;;  %v1337_v40 = vrot.slane %v1283_v61, %v2172_v3 }
 0x14d   :  { %v1333_v1 = vrot.slane %v1281_v53, %v2172_v3  ;;  %v2185_v2 = vadd.f32 %v837_v54, %v823_v32  ;;  %vm1125_vm12 = vcmp.eq.f32.partialorder %v2168_v37, 0.0  ;;  %v874_v9 = vrot.slane %v873_v62, 4 }
 0x14e   :  { %v1341_v59 = vrot.slane %v1285_v63, %v2172_v3  ;;  %v848_v14 = vrot.slane %v847_v0, 2  ;;  %v868_v15 = vadd.f32 %v867_v49, %v866_v4  ;;  %v1126_v21 = vand.u32 2147483648, %v2168_v37 }
 0x14f   :  { %v1446_v58 = vcombine.low %v1329_v55, %v1333_v1  ;;  %1719 = vrsqrt.f32 %v2185_v2  ;;  %vm1130_vm13 = vcmp.eq.f32.partialorder %v2175_v31, inf  ;;  %vm1132_vm14 = vcmp.eq.f32.partialorder %v2175_v31, 0.0 }
 0x150   :  { %v1447_v20 = vcombine.low %v1337_v40, %v1341_v59  ;;  %v1133_v60 = vand.u32 2147483648, %v2175_v31  ;;  %v843_v46 = vrot.slane %v842_v8, 1  ;;  %v875_v33 = vadd.f32 %v874_v9, %v873_v62 }
 0x151   :  { %v1714_v17 = vpop.eup %1713  ;;  %v1470_v30 = vmul.f32 %v1446_v58, %v2018_v10  ;;  %v1471_v47 = vmul.f32 %v1446_v58, %v2022_v12  ;;  %vm1137_vm15 = vcmp.eq.f32.partialorder %v2185_v2, inf  ;;  %v2208_v12 = vadd.f32 %v848_v14, %v847_v0 }
 0x152   :  { %v1716_v38 = vpop.eup %1715  ;;  %v1472_v5 = vmul.f32 %v1447_v20, %v2020_v11  ;;  %v1473_v4 = vmul.f32 %v1447_v20, %v2024_v13  ;;  %v1115_v41 = vmul.f32 %v1714_v17, %v2166_v36  ;;  %v869_v11 = vrot.slane %v868_v15, 2 }
 0x153   :  { %1494 = vst [vmem:[%s2611_s2] sm:$0xff] %v1470_v30  ;;  %1495 = vst [vmem:[%s2611_s2 + $0x8] sm:$0xff] %v1471_v47  ;;  %v1122_v10 = vmul.f32 %v1716_v38, %v2168_v37  ;;  %vm1139_vm1 = vcmp.eq.f32.partialorder %v2185_v2, 0.0  ;;  %v2222_v44 = vcombine.low %v2050_v39, %v2054_v45  ;;  %v2226_v32 = vcombine.high %v2050_v39, %v2054_v45 }
 0x154   :  { %1496 = vst [vmem:[%s2611_s2 + $0x10] sm:$0xff] %v1472_v5  ;;  %1497 = vst [vmem:[%s2611_s2 + $0x18] sm:$0xff] %v1473_v4  ;;  %v1117_v13 = vsel %vm1116_vm9, %v2166_v36, %v1115_v41  ;;  %v2230_v48 = vcombine.low %v2058_v50, %v2062_v56  ;;  %v1718_v52 = vpop.eup %1717  ;;  %v1140_v49 = vand.u32 2147483648, %v2185_v2  ;;  %v2238_v62 = vadd.f32 %v843_v46, %v842_v8 }
 0x155   :  { %v1120_v61 = vsel %vm1118_vm10, %v1119_v16, %v1117_v13  ;;  %v1124_v7 = vsel %vm1123_vm11, %v2168_v37, %v1122_v10  ;;  %v1129_v45 = vmul.f32 %v1718_v52, %v2175_v31  ;;  %v876_v53 = vrot.slane %v875_v33, 2 }
 0x156   :  { %v1127_v39 = vsel %vm1125_vm12, %v1126_v21, %v1124_v7  ;;  %v1258_v6 = vadd.f32 1e-08, %v1120_v61  ;;  %v850_v0 = vrot.slane %v2208_v12, 1  ;;  %v638_v36 = vmul.f32 %v2222_v44, %v2222_v44 }
 0x157   :  { %v1259_v54 = vadd.f32 1e-08, %v1127_v39  ;;  %v640_v63 = vmul.f32 %v2226_v32, %v2226_v32  ;;  %v1131_v16 = vsel %vm1130_vm13, %v2175_v31, %v1129_v45  ;;  %v870_v37 = vadd.f32 %v869_v11, %v868_v15 }
 0x158   :  { %1721 = vrcp.f32 %v1258_v6  ;;  %v2253_v55 = vcombine.high %v2058_v50, %v2062_v56  ;;  %v1134_v8 = vsel %vm1132_vm14, %v1133_v60, %v1131_v16  ;;  %v686_v40 = vcombine.high %v638_v36, %v638_v36 }
 0x159   :  { %v1720_v1 = vpop.eup %1719  ;;  %1723 = vrcp.f32 %v1259_v54  ;;  %v688_v59 = vcombine.high %v640_v63, %v640_v63  ;;  %v1260_v58 = vadd.f32 1e-08, %v1134_v8  ;;  %v877_v14 = vadd.f32 %v876_v53, %v875_v33 }
 0x15a   :  { %v1136_v9 = vmul.f32 %v1720_v1, %v2185_v2  ;;  %v852_v20 = vsel %vm725_vm0, %v638_v36, 0.0  ;;  %v859_v15 = vsel %vm725_vm0, %v686_v40, 0.0  ;;  %v880_v17 = vsel %vm725_vm0, %v640_v63, 0.0 }
 0x15b   :  { %v853_v21 = vrot.slane %v852_v20, 4  ;;  %v887_v50 = vsel %vm725_vm0, %v688_v59, 0.0  ;;  %1725 = vrcp.f32 %v1260_v58  ;;  %v860_v31 = vrot.slane %v859_v15, 4 }
 0x15c   :  { %v1138_v56 = vsel %vm1137_vm15, %v2185_v2, %v1136_v9  ;;  %v881_v30 = vrot.slane %v880_v17, 4  ;;  %v888_v46 = vrot.slane %v887_v50, 4  ;;  %v641_v38 = vmul.f32 %v2230_v48, %v2230_v48 }
 0x15d   :  { %v1141_v47 = vsel %vm1139_vm1, %v1140_v49, %v1138_v56  ;;  %v854_v60 = vadd.f32 %v853_v21, %v852_v20  ;;  %v871_v4 = vrot.slane %v870_v37, 1  ;;  %v861_v41 = vadd.f32 %v860_v31, %v859_v15 }
 0x15e   :  { %v1261_v5 = vadd.f32 1e-08, %v1141_v47  ;;  %v882_v33 = vadd.f32 %v881_v30, %v880_v17  ;;  %v889_v11 = vadd.f32 %v888_v46, %v887_v50  ;;  %v689_v13 = vcombine.high %v641_v38, %v641_v38 }
 0x15f   :  { %v855_v10 = vrot.slane %v854_v60, 2  ;;  %v894_v52 = vsel %vm725_vm0, %v641_v38, 0.0  ;;  %v878_v61 = vrot.slane %v877_v14, 1  ;;  %v862_v7 = vrot.slane %v861_v41, 2 }
 0x160   :  { %1727 = vrcp.f32 %v1261_v5  ;;  %v883_v39 = vrot.slane %v882_v33, 2  ;;  %v890_v49 = vrot.slane %v889_v11, 2  ;;  %v895_v45 = vrot.slane %v894_v52, 4 }
 0x161   :  { %v856_v2 = vadd.f32 %v855_v10, %v854_v60  ;;  %v901_v6 = vsel %vm725_vm0, %v689_v13, 0.0  ;;  %v851_v54 = vadd.f32 %v850_v0, %v2208_v12  ;;  %v863_v36 = vadd.f32 %v862_v7, %v861_v41 }
 0x162   :  { %v1722_v53 = vpop.eup %1721  ;;  %v884_v63 = vadd.f32 %v883_v39, %v882_v33  ;;  %v902_v16 = vrot.slane %v901_v6, 4  ;;  %v872_v40 = vadd.f32 %v871_v4, %v870_v37  ;;  %v891_v9 = vadd.f32 %v890_v49, %v889_v11 }
 0x163   :  { %v1724_v1 = vpop.eup %1723  ;;  %v1287_v8 = vmul.f32 0.01, %v1722_v53  ;;  %v857_v59 = vrot.slane %v856_v2, 1  ;;  %v864_v20 = vrot.slane %v863_v36, 1  ;;  %v896_v15 = vadd.f32 %v895_v45, %v894_v52 }
 0x164   :  { %v1289_v58 = vmul.f32 0.01, %v1724_v1  ;;  %v885_v21 = vrot.slane %v884_v63, 1  ;;  %v879_v17 = vadd.f32 %v878_v61, %v877_v14  ;;  %v892_v56 = vrot.slane %v891_v9, 1 }
 0x165   :  { %v858_v50 = vadd.f32 %v857_v59, %v856_v2  ;;  %v903_v31 = vadd.f32 %v902_v16, %v901_v6  ;;  %v1726_v30 = vpop.eup %1725  ;;  %v1345_v47 = vrot.slane %v1287_v8, %v2172_v3  ;;  %v865_v0 = vadd.f32 %v864_v20, %v863_v36 }
 0x166   :  { %v1349_v12 = vrot.slane %v1289_v58, %v2172_v3  ;;  %v886_v60 = vadd.f32 %v885_v21, %v884_v63  ;;  %v893_v46 = vadd.f32 %v892_v56, %v891_v9  ;;  %v643_v38 = vmul.f32 %v2253_v55, %v2253_v55 }
 0x167   :  { %v2275_v37 = vadd.f32 %v858_v50, %v2238_v62  ;;  %v2279_v4 = vadd.f32 %v865_v0, %v851_v54  ;;  %v897_v41 = vrot.slane %v896_v15, 2  ;;  %v1291_v33 = vmul.f32 0.01, %v1726_v30 }
 0x168   :  { %v1448_v5 = vcombine.low %v1345_v47, %v1349_v12  ;;  %v2281_v14 = vadd.f32 %v886_v60, %v872_v40  ;;  %v2283_v10 = vadd.f32 %v893_v46, %v879_v17  ;;  %v904_v11 = vrot.slane %v903_v31, 2 }
 0x169   :  { %1729 = vrsqrt.f32 %v2275_v37  ;;  %v691_v7 = vcombine.high %v643_v38, %v643_v38  ;;  %v898_v39 = vadd.f32 %v897_v41, %v896_v15  ;;  %v922_v2 = vsel %vm725_vm0, %v643_v38, 0.0 }
 0x16a   :  { %v1728_v13 = vpop.eup %1727  ;;  %v1474_v52 = vmul.f32 %v1448_v5, %v2034_v22  ;;  %v1475_v62 = vmul.f32 %v1448_v5, %v2038_v24  ;;  %1731 = vrsqrt.f32 %v2279_v4  ;;  %v1353_v22 = vrot.slane %v1291_v33, %v2172_v3 }
 0x16b   :  { %v1293_v61 = vmul.f32 0.01, %v1728_v13  ;;  %1733 = vrsqrt.f32 %v2281_v14  ;;  %v2300_v49 = vadd.f32 %v904_v11, %v903_v31  ;;  %vm1144_vm2 = vcmp.eq.f32.partialorder %v2275_v37, inf }
 0x16c   :  { %1498 = vst [vmem:[%s2611_s2 + $0x20] sm:$0xff] %v1474_v52  ;;  %1499 = vst [vmem:[%s2611_s2 + $0x28] sm:$0xff] %v1475_v62  ;;  %1735 = vrsqrt.f32 %v2283_v10  ;;  %vm1146_vm3 = vcmp.eq.f32.partialorder %v2275_v37, 0.0  ;;  %v1147_v45 = vand.u32 2147483648, %v2275_v37  ;;  %v1154_v6 = vand.u32 2147483648, %v2279_v4 }
 0x16d   :  { %v1357_v24 = vrot.slane %v1293_v61, %v2172_v3  ;;  %vm1151_vm4 = vcmp.eq.f32.partialorder %v2279_v4, inf  ;;  %v923_v54 = vrot.slane %v922_v2, 4  ;;  %v929_v36 = vsel %vm725_vm0, %v691_v7, 0.0 }
 0x16e   :  { %v2310_v63 = vcombine.low %v2060_v51, %v2064_v57  ;;  %vm1153_vm5 = vcmp.eq.f32.partialorder %v2279_v4, 0.0  ;;  %vm1158_vm6 = vcmp.eq.f32.partialorder %v2281_v14, inf  ;;  %v1161_v16 = vand.u32 2147483648, %v2281_v14 }
 0x16f   :  { %v1449_v53 = vcombine.low %v1353_v22, %v1357_v24  ;;  %v899_v1 = vrot.slane %v898_v39, 1  ;;  %v930_v8 = vrot.slane %v929_v36, 4  ;;  %v2317_v40 = vcombine.high %v2060_v51, %v2064_v57 }
 0x170   :  { %vm1160_vm7 = vcmp.eq.f32.partialorder %v2281_v14, 0.0  ;;  %vm1165_vm8 = vcmp.eq.f32.partialorder %v2283_v10, inf  ;;  %v924_v58 = vadd.f32 %v923_v54, %v922_v2  ;;  %v642_v20 = vmul.f32 %v2310_v63, %v2310_v63 }
 0x171   :  { %v1476_v59 = vmul.f32 %v1449_v53, %v2036_v23  ;;  %v1477_v9 = vmul.f32 %v1449_v53, %v2040_v25  ;;  %v931_v21 = vadd.f32 %v930_v8, %v929_v36  ;;  %v644_v15 = vmul.f32 %v2317_v40, %v2317_v40 }
 0x172   :  { %v2329_v51 = vcombine.low %v2066_v18, %v2070_v28  ;;  %v2333_v23 = vcombine.high %v2066_v18, %v2070_v28  ;;  %v925_v57 = vrot.slane %v924_v58, 2  ;;  %v690_v17 = vcombine.high %v642_v20, %v642_v20 }
 0x173   :  { %v1730_v25 = vpop.eup %1729  ;;  %1500 = vst [vmem:[%s2611_s2 + $0x30] sm:$0xff] %v1476_v59  ;;  %1501 = vst [vmem:[%s2611_s2 + $0x38] sm:$0xff] %v1477_v9  ;;  %v908_v50 = vsel %vm725_vm0, %v642_v20, 0.0  ;;  %v2344_v56 = vcombine.low %v2068_v19, %v2072_v29  ;;  %vm1167_vm9 = vcmp.eq.f32.partialorder %v2283_v10, 0.0  ;;  %v1168_v28 = vand.u32 2147483648, %v2283_v10 }
 0x174   :  { %v1143_v18 = vmul.f32 %v1730_v25, %v2275_v37  ;;  %v909_v31 = vrot.slane %v908_v50, 4  ;;  %v1732_v30 = vpop.eup %1731  ;;  %v900_v47 = vadd.f32 %v899_v1, %v898_v39  ;;  %v906_v12 = vrot.slane %v2300_v49, 1 }
 0x175   :  { %v932_v0 = vrot.slane %v931_v21, 2  ;;  %v915_v60 = vsel %vm725_vm0, %v690_v17, 0.0  ;;  %v1734_v46 = vpop.eup %1733  ;;  %v1150_v5 = vmul.f32 %v1732_v30, %v2279_v4  ;;  %v692_v41 = vcombine.high %v644_v15, %v644_v15 }
 0x176   :  { %v1145_v38 = vsel %vm1144_vm2, %v2275_v37, %v1143_v18  ;;  %v910_v33 = vadd.f32 %v909_v31, %v908_v50  ;;  %v1736_v11 = vpop.eup %1735  ;;  %v1157_v52 = vmul.f32 %v1734_v46, %v2281_v14  ;;  %v926_v62 = vadd.f32 %v925_v57, %v924_v58 }
 0x177   :  { %v1148_v13 = vsel %vm1146_vm3, %v1147_v45, %v1145_v38  ;;  %v936_v61 = vsel %vm725_vm0, %v644_v15, 0.0  ;;  %v1152_v7 = vsel %vm1151_vm4, %v2279_v4, %v1150_v5  ;;  %v1164_v39 = vmul.f32 %v1736_v11, %v2283_v10 }
 0x178   :  { %v1262_v2 = vadd.f32 1e-08, %v1148_v13  ;;  %v916_v22 = vrot.slane %v915_v60, 4  ;;  %v1155_v24 = vsel %vm1153_vm5, %v1154_v6, %v1152_v7  ;;  %v1159_v37 = vsel %vm1158_vm6, %v2281_v14, %v1157_v52 }
 0x179   :  { %v911_v45 = vrot.slane %v910_v33, 2  ;;  %v645_v53 = vmul.f32 %v2329_v51, %v2329_v51  ;;  %v1162_v54 = vsel %vm1160_vm7, %v1161_v16, %v1159_v37  ;;  %v1166_v36 = vsel %vm1165_vm8, %v2283_v10, %v1164_v39 }
 0x17a   :  { %v1263_v1 = vadd.f32 1e-08, %v1155_v24  ;;  %1737 = vrcp.f32 %v1262_v2  ;;  %v1169_v4 = vsel %vm1167_vm9, %v1168_v28, %v1166_v36  ;;  %v1264_v6 = vadd.f32 1e-08, %v1162_v54 }
 0x17b   :  { %v933_v8 = vadd.f32 %v932_v0, %v931_v21  ;;  %v912_v59 = vadd.f32 %v911_v45, %v910_v33  ;;  %v1265_v9 = vadd.f32 1e-08, %v1169_v4  ;;  %v917_v58 = vadd.f32 %v916_v22, %v915_v60 }
 0x17c   :  { %1739 = vrcp.f32 %v1263_v1  ;;  %v937_v20 = vrot.slane %v936_v61, 4  ;;  %v927_v15 = vrot.slane %v926_v62, 1  ;;  %v943_v16 = vsel %vm725_vm0, %v692_v41, 0.0 }
 0x17d   :  { %1741 = vrcp.f32 %v1264_v6  ;;  %v913_v14 = vrot.slane %v912_v59, 1  ;;  %v918_v25 = vrot.slane %v917_v58, 2  ;;  %v944_v17 = vrot.slane %v943_v16, 4 }
 0x17e   :  { %1743 = vrcp.f32 %v1265_v9  ;;  %v938_v57 = vadd.f32 %v937_v20, %v936_v61  ;;  %v647_v10 = vmul.f32 %v2333_v23, %v2333_v23  ;;  %v693_v18 = vcombine.high %v645_v53, %v645_v53 }
 0x17f   :  { %v914_v50 = vadd.f32 %v913_v14, %v912_v59  ;;  %v950_v21 = vsel %vm725_vm0, %v645_v53, 0.0  ;;  %v919_v28 = vadd.f32 %v918_v25, %v917_v58  ;;  %v945_v30 = vadd.f32 %v944_v17, %v943_v16 }
 0x180   :  { %v939_v31 = vrot.slane %v938_v57, 2  ;;  %v951_v0 = vrot.slane %v950_v21, 4  ;;  %v907_v60 = vadd.f32 %v906_v12, %v2300_v49  ;;  %v934_v46 = vrot.slane %v933_v8, 1 }
 0x181   :  { %v2382_v38 = vadd.f32 %v914_v50, %v900_v47  ;;  %v920_v5 = vrot.slane %v919_v28, 1  ;;  %v946_v33 = vrot.slane %v945_v30, 2  ;;  %v957_v11 = vsel %vm725_vm0, %v693_v18, 0.0 }
 0x182   :  { %v940_v41 = vadd.f32 %v939_v31, %v938_v57  ;;  %v695_v13 = vcombine.high %v647_v10, %v647_v10  ;;  %v952_v52 = vadd.f32 %v951_v0, %v950_v21  ;;  %v978_v61 = vsel %vm725_vm0, %v647_v10, 0.0 }
 0x183   :  { %1745 = vrsqrt.f32 %v2382_v38  ;;  %v928_v39 = vadd.f32 %v927_v15, %v926_v62  ;;  %v921_v2 = vadd.f32 %v920_v5, %v919_v28  ;;  %v947_v24 = vadd.f32 %v946_v33, %v945_v30 }
 0x184   :  { %v1738_v7 = vpop.eup %1737  ;;  %v941_v22 = vrot.slane %v940_v41, 1  ;;  %v935_v12 = vadd.f32 %v934_v46, %v933_v8  ;;  %v958_v47 = vrot.slane %v957_v11, 4  ;;  %v979_v36 = vrot.slane %v978_v61, 4 }
 0x185   :  { %v1295_v49 = vmul.f32 0.01, %v1738_v7  ;;  %v948_v53 = vrot.slane %v947_v24, 1  ;;  %v2387_v54 = vadd.f32 %v921_v2, %v907_v60  ;;  %vm1172_vm10 = vcmp.eq.f32.partialorder %v2382_v38, inf }
 0x186   :  { %v1740_v37 = vpop.eup %1739  ;;  %v942_v45 = vadd.f32 %v941_v22, %v940_v41  ;;  %v953_v6 = vrot.slane %v952_v52, 2  ;;  %v985_v59 = vsel %vm725_vm0, %v695_v13, 0.0  ;;  %vm1174_vm11 = vcmp.eq.f32.partialorder %v2382_v38, 0.0 }
 0x187   :  { %v1742_v1 = vpop.eup %1741  ;;  %v1297_v4 = vmul.f32 0.01, %v1740_v37  ;;  %v949_v58 = vadd.f32 %v948_v53, %v947_v24  ;;  %1747 = vrsqrt.f32 %v2387_v54  ;;  %v1361_v15 = vrot.slane %v1295_v49, %v2172_v3 }
 0x188   :  { %v1744_v62 = vpop.eup %1743  ;;  %v1299_v9 = vmul.f32 0.01, %v1742_v1  ;;  %v2391_v20 = vadd.f32 %v942_v45, %v928_v39  ;;  %v959_v25 = vadd.f32 %v958_v47, %v957_v11  ;;  %v980_v57 = vadd.f32 %v979_v36, %v978_v61 }
 0x189   :  { %v1301_v8 = vmul.f32 0.01, %v1744_v62  ;;  %v1365_v14 = vrot.slane %v1297_v4, %v2172_v3  ;;  %v2397_v16 = vadd.f32 %v949_v58, %v935_v12  ;;  %v986_v18 = vrot.slane %v985_v59, 4 }
 0x18a   :  { %1749 = vrsqrt.f32 %v2391_v20  ;;  %v1369_v17 = vrot.slane %v1299_v9, %v2172_v3  ;;  %v1175_v21 = vand.u32 2147483648, %v2382_v38  ;;  %vm1179_vm12 = vcmp.eq.f32.partialorder %v2387_v54, inf }
 0x18b   :  { %v1373_v50 = vrot.slane %v1301_v8, %v2172_v3  ;;  %v1450_v10 = vcombine.low %v1361_v15, %v1365_v14  ;;  %1751 = vrsqrt.f32 %v2397_v16  ;;  %v954_v28 = vadd.f32 %v953_v6, %v952_v52 }
 0x18c   :  { %vm1181_vm13 = vcmp.eq.f32.partialorder %v2387_v54, 0.0  ;;  %v1182_v46 = vand.u32 2147483648, %v2387_v54  ;;  %vm1186_vm14 = vcmp.eq.f32.partialorder %v2391_v20, inf  ;;  %v1189_v41 = vand.u32 2147483648, %v2391_v20 }
 0x18d   :  { %v1746_v31 = vpop.eup %1745  ;;  %v1451_v30 = vcombine.low %v1369_v17, %v1373_v50  ;;  %v1478_v0 = vmul.f32 %v1450_v10, %v2118_v26  ;;  %v1479_v60 = vmul.f32 %v1450_v10, %v2222_v44  ;;  %v960_v33 = vrot.slane %v959_v25, 2 }
 0x18e   :  { %v1171_v5 = vmul.f32 %v1746_v31, %v2382_v38  ;;  %v981_v11 = vrot.slane %v980_v57, 2  ;;  %vm1188_vm15 = vcmp.eq.f32.partialorder %v2391_v20, 0.0  ;;  %v987_v26 = vadd.f32 %v986_v18, %v985_v59 }
 0x18f   :  { %v1480_v13 = vmul.f32 %v1451_v30, %v2122_v27  ;;  %v1481_v52 = vmul.f32 %v1451_v30, %v2226_v32  ;;  %1502 = vst [vmem:[%s2611_s2 + $0x40] sm:$0xff] %v1478_v0  ;;  %1503 = vst [vmem:[%s2611_s2 + $0x48] sm:$0xff] %v1479_v60  ;;  %v2423_v44 = vcombine.high %v2068_v19, %v2072_v29  ;;  %v955_v32 = vrot.slane %v954_v28, 1 }
 0x190   :  { %v1173_v27 = vsel %vm1172_vm10, %v2382_v38, %v1171_v5  ;;  %v961_v61 = vadd.f32 %v960_v33, %v959_v25  ;;  %v2428_v7 = vadd.f32 %v981_v11, %v980_v57  ;;  %vm1193_vm1 = vcmp.eq.f32.partialorder %v2397_v16, inf }
 0x191   :  { %1504 = vst [vmem:[%s2611_s2 + $0x50] sm:$0xff] %v1480_v13  ;;  %1505 = vst [vmem:[%s2611_s2 + $0x58] sm:$0xff] %v1481_v52  ;;  %v1176_v19 = vsel %vm1174_vm11, %v1175_v21, %v1173_v27  ;;  %v646_v29 = vmul.f32 %v2344_v56, %v2344_v56  ;;  %v648_v39 = vmul.f32 %v2423_v44, %v2423_v44  ;;  %v1748_v2 = vpop.eup %1747  ;;  %vm1195_vm2 = vcmp.eq.f32.partialorder %v2397_v16, 0.0 }
 0x192   :  { %v1196_v22 = vand.u32 2147483648, %v2397_v16  ;;  %v1266_v24 = vadd.f32 1e-08, %v1176_v19  ;;  %v2447_v49 = vcombine.low %v2074_v34, %v2082_v42  ;;  %v1178_v38 = vmul.f32 %v1748_v2, %v2387_v54 }
 0x193   :  { %v988_v12 = vrot.slane %v987_v26, 2  ;;  %v694_v47 = vcombine.high %v646_v29, %v646_v29  ;;  %v696_v37 = vcombine.high %v648_v39, %v648_v39  ;;  %v956_v53 = vadd.f32 %v955_v32, %v954_v28 }
 0x194   :  { %v1750_v45 = vpop.eup %1749  ;;  %v962_v36 = vrot.slane %v961_v61, 1  ;;  %v983_v1 = vrot.slane %v2428_v7, 1  ;;  %v964_v4 = vsel %vm725_vm0, %v646_v29, 0.0  ;;  %v1180_v6 = vsel %vm1179_vm12, %v2387_v54, %v1178_v38 }
 0x195   :  { %v1185_v59 = vmul.f32 %v1750_v45, %v2391_v20  ;;  %1753 = vrcp.f32 %v1266_v24  ;;  %v965_v62 = vrot.slane %v964_v4, 4  ;;  %v1752_v9 = vpop.eup %1751  ;;  %v1183_v58 = vsel %vm1181_vm13, %v1182_v46, %v1180_v6 }
 0x196   :  { %v971_v8 = vsel %vm725_vm0, %v694_v47, 0.0  ;;  %v992_v15 = vsel %vm725_vm0, %v648_v39, 0.0  ;;  %v999_v14 = vsel %vm725_vm0, %v696_v37, 0.0  ;;  %v1192_v57 = vmul.f32 %v1752_v9, %v2397_v16 }
 0x197   :  { %v1187_v25 = vsel %vm1186_vm14, %v2391_v20, %v1185_v59  ;;  %v1267_v17 = vadd.f32 1e-08, %v1183_v58  ;;  %v989_v50 = vadd.f32 %v988_v12, %v987_v26  ;;  %v966_v18 = vadd.f32 %v965_v62, %v964_v4 }
 0x198   :  { %v1190_v10 = vsel %vm1188_vm15, %v1189_v41, %v1187_v25  ;;  %v972_v54 = vrot.slane %v971_v8, 4  ;;  %v993_v21 = vrot.slane %v992_v15, 4  ;;  %v1194_v28 = vsel %vm1193_vm1, %v2397_v16, %v1192_v57 }
 0x199   :  { %v1268_v31 = vadd.f32 1e-08, %v1190_v10  ;;  %1755 = vrcp.f32 %v1267_v17  ;;  %v1000_v30 = vrot.slane %v999_v14, 4  ;;  %v1197_v0 = vsel %vm1195_vm2, %v1196_v22, %v1194_v28 }
 0x19a   :  { %v967_v60 = vrot.slane %v966_v18, 2  ;;  %v973_v46 = vadd.f32 %v972_v54, %v971_v8  ;;  %v994_v5 = vadd.f32 %v993_v21, %v992_v15  ;;  %v1269_v33 = vadd.f32 1e-08, %v1197_v0 }
 0x19b   :  { %1757 = vrcp.f32 %v1268_v31  ;;  %v1001_v20 = vadd.f32 %v1000_v30, %v999_v14  ;;  %v2474_v41 = vcombine.high %v2074_v34, %v2082_v42  ;;  %v649_v26 = vmul.f32 %v2447_v49, %v2447_v49 }
 0x19c   :  { %v968_v11 = vadd.f32 %v967_v60, %v966_v18  ;;  %v974_v13 = vrot.slane %v973_v46, 2  ;;  %v995_v52 = vrot.slane %v994_v5, 2  ;;  %1759 = vrcp.f32 %v1269_v33 }
 0x19d   :  { %v990_v27 = vrot.slane %v989_v50, 1  ;;  %v1002_v16 = vrot.slane %v1001_v20, 2  ;;  %v2480_v32 = vcombine.low %v2076_v35, %v2084_v43  ;;  %v963_v19 = vadd.f32 %v962_v36, %v961_v61 }
 0x19e   :  { %v969_v29 = vrot.slane %v968_v11, 1  ;;  %v975_v39 = vadd.f32 %v974_v13, %v973_v46  ;;  %v996_v2 = vadd.f32 %v995_v52, %v994_v5  ;;  %v984_v34 = vadd.f32 %v983_v1, %v2428_v7 }
 0x19f   :  { %v1754_v22 = vpop.eup %1753  ;;  %v1003_v42 = vadd.f32 %v1002_v16, %v1001_v20  ;;  %v651_v24 = vmul.f32 %v2474_v41, %v2474_v41  ;;  %v697_v38 = vcombine.high %v649_v26, %v649_v26  ;;  %v1006_v45 = vsel %vm725_vm0, %v649_v26, 0.0 }
 0x1a0   :  { %v970_v12 = vadd.f32 %v969_v29, %v968_v11  ;;  %v976_v47 = vrot.slane %v975_v39, 1  ;;  %v997_v37 = vrot.slane %v996_v2, 1  ;;  %v991_v4 = vadd.f32 %v990_v27, %v989_v50 }
 0x1a1   :  { %v1004_v6 = vrot.slane %v1003_v42, 1  ;;  %v1303_v59 = vmul.f32 0.01, %v1754_v22  ;;  %v699_v7 = vcombine.high %v651_v24, %v651_v24  ;;  %v1007_v1 = vrot.slane %v1006_v45, 4 }
 0x1a2   :  { %v977_v61 = vadd.f32 %v976_v47, %v975_v39  ;;  %v998_v36 = vadd.f32 %v997_v37, %v996_v2  ;;  %v2486_v62 = vadd.f32 %v970_v12, %v956_v53  ;;  %v1013_v8 = vsel %vm725_vm0, %v697_v38, 0.0 }
 0x1a3   :  { %v1756_v9 = vpop.eup %1755  ;;  %v1005_v58 = vadd.f32 %v1004_v6, %v1003_v42  ;;  %v1034_v50 = vsel %vm725_vm0, %v651_v24, 0.0  ;;  %v1377_v10 = vrot.slane %v1303_v59, %v2172_v3  ;;  %v1008_v21 = vadd.f32 %v1007_v1, %v1006_v45 }
 0x1a4   :  { %v1305_v15 = vmul.f32 0.01, %v1756_v9  ;;  %v2489_v14 = vadd.f32 %v977_v61, %v963_v19  ;;  %v2491_v25 = vadd.f32 %v998_v36, %v984_v34  ;;  %1761 = vrsqrt.f32 %v2486_v62 }
 0x1a5   :  { %v1758_v57 = vpop.eup %1757  ;;  %v2494_v17 = vadd.f32 %v1005_v58, %v991_v4  ;;  %v1014_v28 = vrot.slane %v1013_v8, 4  ;;  %v1035_v0 = vrot.slane %v1034_v50, 4  ;;  %v1041_v60 = vsel %vm725_vm0, %v699_v7, 0.0 }
 0x1a6   :  { %v1307_v53 = vmul.f32 0.01, %v1758_v57  ;;  %v1381_v18 = vrot.slane %v1305_v15, %v2172_v3  ;;  %1763 = vrsqrt.f32 %v2489_v14  ;;  %v1760_v54 = vpop.eup %1759  ;;  %vm1200_vm3 = vcmp.eq.f32.partialorder %v2486_v62, inf }
 0x1a7   :  { %1765 = vrsqrt.f32 %v2491_v25  ;;  %v1309_v31 = vmul.f32 0.01, %v1760_v54  ;;  %vm1202_vm4 = vcmp.eq.f32.partialorder %v2486_v62, 0.0  ;;  %v1203_v46 = vand.u32 2147483648, %v2486_v62 }
 0x1a8   :  { %v1452_v30 = vcombine.low %v1377_v10, %v1381_v18  ;;  %1767 = vrsqrt.f32 %v2494_v17  ;;  %v1385_v5 = vrot.slane %v1307_v53, %v2172_v3  ;;  %vm1207_vm5 = vcmp.eq.f32.partialorder %v2489_v14, inf }
 0x1a9   :  { %v1389_v33 = vrot.slane %v1309_v31, %v2172_v3  ;;  %vm1209_vm6 = vcmp.eq.f32.partialorder %v2489_v14, 0.0  ;;  %v1009_v13 = vrot.slane %v1008_v21, 2  ;;  %v1015_v52 = vadd.f32 %v1014_v28, %v1013_v8 }
 0x1aa   :  { %v1482_v20 = vmul.f32 %v1452_v30, %v2230_v48  ;;  %v1483_v11 = vmul.f32 %v1452_v30, %v2310_v63  ;;  %v1042_v27 = vrot.slane %v1041_v60, 4  ;;  %v2520_v48 = vcombine.high %v2076_v35, %v2084_v43 }
 0x1ab   :  { %v1453_v26 = vcombine.low %v1385_v5, %v1389_v33  ;;  %v650_v63 = vmul.f32 %v2480_v32, %v2480_v32  ;;  %v1210_v16 = vand.u32 2147483648, %v2489_v14  ;;  %vm1214_vm7 = vcmp.eq.f32.partialorder %v2491_v25, inf }
 0x1ac   :  { %1506 = vst [vmem:[%s2611_s2 + $0x60] sm:$0xff] %v1482_v20  ;;  %1507 = vst [vmem:[%s2611_s2 + $0x68] sm:$0xff] %v1483_v11  ;;  %vm1216_vm8 = vcmp.eq.f32.partialorder %v2491_v25, 0.0  ;;  %v1036_v19 = vadd.f32 %v1035_v0, %v1034_v50  ;;  %v1010_v22 = vadd.f32 %v1009_v13, %v1008_v21  ;;  %v1016_v34 = vrot.slane %v1015_v52, 2 }
 0x1ad   :  { %v1484_v39 = vmul.f32 %v1453_v26, %v2253_v55  ;;  %v1485_v2 = vmul.f32 %v1453_v26, %v2317_v40  ;;  %v1217_v43 = vand.u32 2147483648, %v2491_v25  ;;  %vm1221_vm9 = vcmp.eq.f32.partialorder %v2494_v17, inf }
 0x1ae   :  { %v1762_v29 = vpop.eup %1761  ;;  %v698_v42 = vcombine.high %v650_v63, %v650_v63  ;;  %vm1223_vm10 = vcmp.eq.f32.partialorder %v2494_v17, 0.0  ;;  %v1224_v55 = vand.u32 2147483648, %v2494_v17  ;;  %v1043_v40 = vadd.f32 %v1042_v27, %v1041_v60 }
 0x1af   :  { %v1199_v35 = vmul.f32 %v1762_v29, %v2486_v62  ;;  %1508 = vst [vmem:[%s2611_s2 + $0x70] sm:$0xff] %v1484_v39  ;;  %1509 = vst [vmem:[%s2611_s2 + $0x78] sm:$0xff] %v1485_v2  ;;  %v1020_v38 = vsel %vm725_vm0, %v650_v63, 0.0  ;;  %v1037_v45 = vrot.slane %v1036_v19, 2  ;;  %v652_v4 = vmul.f32 %v2520_v48, %v2520_v48 }
 0x1b0   :  { %v1764_v24 = vpop.eup %1763  ;;  %v1011_v61 = vrot.slane %v1010_v22, 1  ;;  %v1017_v36 = vadd.f32 %v1016_v34, %v1015_v52  ;;  %v1021_v1 = vrot.slane %v1020_v38, 4  ;;  %v1027_v8 = vsel %vm725_vm0, %v698_v42, 0.0 }
 0x1b1   :  { %v1766_v12 = vpop.eup %1765  ;;  %v1201_v47 = vsel %vm1200_vm3, %v2486_v62, %v1199_v35  ;;  %v1206_v37 = vmul.f32 %v1764_v24, %v2489_v14  ;;  %v1044_v50 = vrot.slane %v1043_v40, 2  ;;  %v700_v18 = vcombine.high %v652_v4, %v652_v4 }
 0x1b2   :  { %v1204_v6 = vsel %vm1202_vm4, %v1203_v46, %v1201_v47  ;;  %v1213_v59 = vmul.f32 %v1766_v12, %v2491_v25  ;;  %v1768_v9 = vpop.eup %1767  ;;  %v1028_v28 = vrot.slane %v1027_v8, 4  ;;  %v1038_v30 = vadd.f32 %v1037_v45, %v1036_v19 }
 0x1b3   :  { %v1208_v58 = vsel %vm1207_vm5, %v2489_v14, %v1206_v37  ;;  %v1270_v7 = vadd.f32 1e-08, %v1204_v6  ;;  %v1220_v57 = vmul.f32 %v1768_v9, %v2494_v17  ;;  %v1022_v14 = vadd.f32 %v1021_v1, %v1020_v38 }
 0x1b4   :  { %v1211_v15 = vsel %vm1209_vm6, %v1210_v16, %v1208_v58  ;;  %v1215_v62 = vsel %vm1214_vm7, %v2491_v25, %v1213_v59  ;;  %v1048_v0 = vsel %vm725_vm0, %v652_v4, 0.0  ;;  %v1029_v46 = vadd.f32 %v1028_v28, %v1027_v8 }
 0x1b5   :  { %v1218_v53 = vsel %vm1216_vm8, %v1217_v43, %v1215_v62  ;;  %v1271_v10 = vadd.f32 1e-08, %v1211_v15  ;;  %1769 = vrcp.f32 %v1270_v7  ;;  %v1222_v54 = vsel %vm1221_vm9, %v2494_v17, %v1220_v57 }
 0x1b6   :  { %v1272_v21 = vadd.f32 1e-08, %v1218_v53  ;;  %v1225_v31 = vsel %vm1223_vm10, %v1224_v55, %v1222_v54  ;;  %v1023_v25 = vrot.slane %v1022_v14, 2  ;;  %v1018_v5 = vrot.slane %v1017_v36, 1 }
 0x1b7   :  { %1771 = vrcp.f32 %v1271_v10  ;;  %v1273_v60 = vadd.f32 1e-08, %v1225_v31  ;;  %v1045_v33 = vadd.f32 %v1044_v50, %v1043_v40  ;;  %v1049_v20 = vrot.slane %v1048_v0, 4 }
 0x1b8   :  { %1773 = vrcp.f32 %v1272_v21  ;;  %v1055_v11 = vsel %vm725_vm0, %v700_v18, 0.0  ;;  %v1024_v13 = vadd.f32 %v1023_v25, %v1022_v14  ;;  %v1030_v52 = vrot.slane %v1029_v46, 2 }
 0x1b9   :  { %1775 = vrcp.f32 %v1273_v60  ;;  %v1056_v26 = vrot.slane %v1055_v11, 4  ;;  %v1050_v27 = vadd.f32 %v1049_v20, %v1048_v0  ;;  %v1012_v17 = vadd.f32 %v1011_v61, %v1010_v22 }
 0x1ba   :  { %v1025_v63 = vrot.slane %v1024_v13, 1  ;;  %v1031_v16 = vadd.f32 %v1030_v52, %v1029_v46  ;;  %v1019_v29 = vadd.f32 %v1018_v5, %v1017_v36  ;;  %v1039_v39 = vrot.slane %v1038_v30, 1 }
 0x1bb   :  { %v1057_v19 = vadd.f32 %v1056_v26, %v1055_v11  ;;  %v1051_v2 = vrot.slane %v1050_v27, 2  ;;  %v1046_v34 = vrot.slane %v1045_v33, 1 }
 0x1bc   :  { %v1026_v35 = vadd.f32 %v1025_v63, %v1024_v13  ;;  %v1032_v43 = vrot.slane %v1031_v16, 1  ;;  %v1040_v45 = vadd.f32 %v1039_v39, %v1038_v30 }
 0x1bd   :  { %v1058_v42 = vrot.slane %v1057_v19, 2  ;;  %v1052_v55 = vadd.f32 %v1051_v2, %v1050_v27  ;;  %v1047_v59 = vadd.f32 %v1046_v34, %v1045_v33 }
 0x1be   :  { %v1033_v38 = vadd.f32 %v1032_v43, %v1031_v16  ;;  %v1082_v47 = vadd.f32 %v1026_v35, %v1012_v17 }
 0x1bf   :  { %v1770_v24 = vpop.eup %1769  ;;  %v1059_v12 = vadd.f32 %v1058_v42, %v1057_v19  ;;  %v1053_v4 = vrot.slane %v1052_v55, 1 }
 0x1c0   :  { %v1311_v40 = vmul.f32 0.01, %v1770_v24  ;;  %v1083_v36 = vadd.f32 %v1033_v38, %v1019_v29  ;;  %1777 = vrsqrt.f32 %v1082_v47  ;;  %vm1228_vm0 = vcmp.eq.f32.partialorder %v1082_v47, inf }
 0x1c1   :  { %v1772_v37 = vpop.eup %1771  ;;  %v1060_v61 = vrot.slane %v1059_v12, 1  ;;  %v1054_v58 = vadd.f32 %v1053_v4, %v1052_v55  ;;  %v1231_v0 = vand.u32 2147483648, %v1082_v47  ;;  %vm1230_vm11 = vcmp.eq.f32.partialorder %v1082_v47, 0.0 }
 0x1c2   :  { %v1774_v22 = vpop.eup %1773  ;;  %v1313_v6 = vmul.f32 0.01, %v1772_v37  ;;  %v1393_v1 = vrot.slane %v1311_v40, %v2172_v3  ;;  %1779 = vrsqrt.f32 %v1083_v36  ;;  %vm1235_vm12 = vcmp.eq.f32.partialorder %v1083_v36, inf }
 0x1c3   :  { %v1315_v9 = vmul.f32 0.01, %v1774_v22  ;;  %v1776_v7 = vpop.eup %1775  ;;  %v1061_v15 = vadd.f32 %v1060_v61, %v1059_v12  ;;  %v1084_v57 = vadd.f32 %v1054_v58, %v1040_v45  ;;  %vm1237_vm13 = vcmp.eq.f32.partialorder %v1083_v36, 0.0 }
 0x1c4   :  { %v1397_v8 = vrot.slane %v1313_v6, %v2172_v3  ;;  %v1317_v62 = vmul.f32 0.01, %v1776_v7 }
 0x1c5   :  { %v1085_v53 = vadd.f32 %v1061_v15, %v1047_v59  ;;  %v1401_v10 = vrot.slane %v1315_v9, %v2172_v3  ;;  %1781 = vrsqrt.f32 %v1084_v57  ;;  %vm1242_vm14 = vcmp.eq.f32.partialorder %v1084_v57, inf }
 0x1c6   :  { %v1454_v50 = vcombine.low %v1393_v1, %v1397_v8  ;;  %v1405_v18 = vrot.slane %v1317_v62, %v2172_v3  ;;  %vm1244_vm15 = vcmp.eq.f32.partialorder %v1084_v57, 0.0  ;;  %v1245_v52 = vand.u32 2147483648, %v1084_v57 }
 0x1c7   :  { %1783 = vrsqrt.f32 %v1085_v53  ;;  %vm1249_vm1 = vcmp.eq.f32.partialorder %v1085_v53, inf  ;;  %v1252_v16 = vand.u32 2147483648, %v1085_v53  ;;  %vm1251_vm2 = vcmp.eq.f32.partialorder %v1085_v53, 0.0 }
 0x1c8   :  { %v1486_v54 = vmul.f32 %v1454_v50, %v2329_v51  ;;  %v1487_v21 = vmul.f32 %v1454_v50, %v2344_v56  ;;  %v1455_v14 = vcombine.low %v1401_v10, %v1405_v18 }
 0x1ca   :  { %1510 = vst [vmem:[%s2611_s2 + $0x80] sm:$0xff] %v1486_v54  ;;  %1511 = vst [vmem:[%s2611_s2 + $0x88] sm:$0xff] %v1487_v21  ;;  %v1488_v28 = vmul.f32 %v1455_v14, %v2333_v23  ;;  %v1489_v31 = vmul.f32 %v1455_v14, %v2423_v44  ;;  %v1778_v30 = vpop.eup %1777  ;;  %v1238_v44 = vand.u32 2147483648, %v1083_v36 }
 0x1cb   :  { %v1227_v51 = vmul.f32 %v1778_v30, %v1082_v47 }
 0x1cc   :  { %1512 = vst [vmem:[%s2611_s2 + $0x90] sm:$0xff] %v1488_v28  ;;  %1513 = vst [vmem:[%s2611_s2 + $0x98] sm:$0xff] %v1489_v31  ;;  %v1780_v56 = vpop.eup %1779 }
 0x1cd   :  { %v1229_v60 = vsel %vm1228_vm0, %v1082_v47, %v1227_v51  ;;  %v1234_v25 = vmul.f32 %v1780_v56, %v1083_v36 }
 0x1ce   :  { %v1232_v23 = vsel %vm1230_vm11, %v1231_v0, %v1229_v60 }
 0x1cf   :  { %v1782_v46 = vpop.eup %1781  ;;  %v1236_v5 = vsel %vm1235_vm12, %v1083_v36, %v1234_v25  ;;  %v1274_v20 = vadd.f32 1e-08, %v1232_v23 }
 0x1d0   :  { %v1241_v33 = vmul.f32 %v1782_v46, %v1084_v57  ;;  %v1239_v13 = vsel %vm1237_vm13, %v1238_v44, %v1236_v5 }
 0x1d1   :  { %v1784_v11 = vpop.eup %1783  ;;  %v1275_v17 = vadd.f32 1e-08, %v1239_v13  ;;  %1785 = vrcp.f32 %v1274_v20 }
 0x1d2   :  { %v1243_v26 = vsel %vm1242_vm14, %v1084_v57, %v1241_v33  ;;  %v1248_v27 = vmul.f32 %v1784_v11, %v1085_v53 }
 0x1d3   :  { %v1246_v63 = vsel %vm1244_vm15, %v1245_v52, %v1243_v26  ;;  %1787 = vrcp.f32 %v1275_v17 }
 0x1d4   :  { %v1250_v19 = vsel %vm1249_vm1, %v1085_v53, %v1248_v27  ;;  %v1276_v29 = vadd.f32 1e-08, %v1246_v63 }
 0x1d5   :  { %v1253_v39 = vsel %vm1251_vm2, %v1252_v16, %v1250_v19 }
 0x1d6   :  { %v1277_v2 = vadd.f32 1e-08, %v1253_v39  ;;  %1789 = vrcp.f32 %v1276_v29 }
 0x1d8   :  { %1791 = vrcp.f32 %v1277_v2 }
 0x1db   :  { %v1786_v34 = vpop.eup %1785 }
 0x1dc   :  { %v1319_v35 = vmul.f32 0.01, %v1786_v34 }
 0x1dd   :  { %v1788_v43 = vpop.eup %1787 }
 0x1de   :  { %v1321_v42 = vmul.f32 0.01, %v1788_v43  ;;  %v1409_v40 = vrot.slane %v1319_v35, %v2172_v3 }
 0x1e0   :  { %v1790_v24 = vpop.eup %1789  ;;  %v1413_v38 = vrot.slane %v1321_v42, %v2172_v3 }
 0x1e1   :  { %v1323_v55 = vmul.f32 0.01, %v1790_v24 }
 0x1e2   :  { %v1792_v12 = vpop.eup %1791  ;;  %v1456_v37 = vcombine.low %v1409_v40, %v1413_v38 }
 0x1e3   :  { %v1325_v47 = vmul.f32 0.01, %v1792_v12  ;;  %v1417_v45 = vrot.slane %v1323_v55, %v2172_v3 }
 0x1e4   :  { %v1490_v22 = vmul.f32 %v1456_v37, %v2447_v49  ;;  %v1491_v6 = vmul.f32 %v1456_v37, %v2480_v32 }
 0x1e5   :  { %v1421_v4 = vrot.slane %v1325_v47, %v2172_v3 }
 0x1e6   :  { %1514 = vst [vmem:[%s2611_s2 + $0xa0] sm:$0xff] %v1490_v22  ;;  %1515 = vst [vmem:[%s2611_s2 + $0xa8] sm:$0xff] %v1491_v6 }
 0x1e7   :  { %v1457_v59 = vcombine.low %v1417_v45, %v1421_v4 }
 0x1e9   :  { %v1492_v61 = vmul.f32 %v1457_v59, %v2474_v41  ;;  %v1493_v36 = vmul.f32 %v1457_v59, %v2520_v48 }
 0x1eb   :  { %1516 = vst [vmem:[%s2611_s2 + $0xb0] sm:$0xff] %v1492_v61  ;;  %1517 = vst [vmem:[%s2611_s2 + $0xb8] sm:$0xff] %v1493_v36 }

</bundles_post_ra>
